<compile_context>
chip_gen: v7x
topology: tpu7x:2x2x1
jax: 0.10.0
libtpu: 0.0.40
codegen_flags: <defaults>
</compile_context>

<pallas_src>
import functools

import jax
import jax.numpy as jnp
import numpy as np
from jax.experimental import pallas as pl
from jax.experimental.pallas import tpu as pltpu

# ------------------------- hyper-parameters (small test config) -------------------------
VOCAB = 64        # vocab_size
BLOCK_SIZE = 16   # block_size (max positions)
N_EMB = 32        # n_embedding
N_HEAD = 4        # n_head
N_LAYERS = 2      # n_layers
HEAD = N_EMB // N_HEAD
B, T = 2, 8       # batch, sequence length of the example context

VPAD = 128        # lm_head output padded to a full lane width (VOCAB=64 -> 128)
_LN_EPS = 1e-5    # torch.nn.LayerNorm default
_NEG = -1e30      # additive mask value


def _layer_norm(x, gamma, beta):
    """x: (N, C); gamma/beta: (1, C) so the scale/shift is a direct sublane broadcast."""
    mean = jnp.mean(x, axis=-1, keepdims=True)
    var = jnp.mean((x - mean) ** 2, axis=-1, keepdims=True)
    return (x - mean) * jax.lax.rsqrt(var + _LN_EPS) * gamma + beta


def _attention_consts(batch, seqlen):
    """Constant operands for head-packed attention (depend only on B, T, N_HEAD).

    rep_mat   (NH*BT, BT): rep_mat @ q replicates q once per head along sublanes.
    head_mask (NH*BT, C) : 1 where the channel belongs to that sublane-block's head.
    mask_bias (NH*BT, BT): additive 0 / -1e30 causal + same-batch-row mask, per head.
    sel_mat   (BT, NH*BT): folds the per-head outputs back to (BT, C) (== concat(heads)).
    """
    bt = batch * seqlen
    nbt = N_HEAD * bt
    rep_mat = np.tile(np.eye(bt, dtype=np.float32), (N_HEAD, 1))                 # (NH*bt, bt)
    sel_mat = np.ascontiguousarray(rep_mat.T)                                    # (bt, NH*bt)
    head_of_row = np.arange(nbt) // bt
    head_of_col = np.arange(N_EMB) // HEAD
    head_mask = (head_of_row[:, None] == head_of_col[None, :]).astype(np.float32)  # (NH*bt, C)
    i = np.arange(bt)
    same_batch = (i[:, None] // seqlen) == (i[None, :] // seqlen)
    causal = (i[None, :] % seqlen) <= (i[:, None] % seqlen)
    bias = np.where(same_batch & causal, 0.0, _NEG).astype(np.float32)           # (bt, bt)
    mask_bias = np.tile(bias, (N_HEAD, 1))                                       # (NH*bt, bt)
    return (jnp.asarray(rep_mat), jnp.asarray(head_mask),
            jnp.asarray(mask_bias), jnp.asarray(sel_mat))


def _transformer_stack(x, rep_mat, head_mask, mask_bias, sel_mat,
                       ln1_g, ln1_b, wqkv, wproj, bproj,
                       ln2_g, ln2_b, w1, b1, w2, b2, lnf_g, lnf_b, wlm, blm,
                       *, in_kernel, precision=None):
    """Shared math for kernel + reference.

    x: (B*T, C) activations.  Weight args may be VMEM Refs (kernel) or plain arrays
    (reference); they are indexed lazily per use.  Returns (B*T, VPAD) lane-dense logits.
    """
    C = N_EMB
    for l in range(N_LAYERS):
        # ---- causal multi-head self-attention (pre-LN, residual), heads packed on sublanes ----
        h = _layer_norm(x, ln1_g[l:l + 1], ln1_b[l:l + 1])
        qkv = jnp.dot(h, wqkv[l], precision=precision,
                      preferred_element_type=jnp.float32)                      # (BT, 3C)
        q = qkv[:, 0:C]
        k = qkv[:, C:2 * C]
        v = qkv[:, 2 * C:3 * C]
        # Replicate q per head along sublanes, zero out other heads' channels.
        q_bd = jnp.dot(rep_mat, q, precision=precision,
                       preferred_element_type=jnp.float32) * head_mask         # (NH*BT, C)
        # Per-head scores for all heads in one matmul (contraction over channels).
        s = jax.lax.dot_general(q_bd, k, (((1,), (1,)), ((), ())),
                                precision=precision,
                                preferred_element_type=jnp.float32)            # (NH*BT, BT)
        s = s + mask_bias                                                      # additive 0 / -1e30
        s = s - jnp.max(s, axis=-1, keepdims=True)
        e = jnp.exp(s)
        denom = jnp.sum(e, axis=-1, keepdims=True)                             # (NH*BT, 1)
        inv = pl.reciprocal(denom, approx=False) if in_kernel else 1.0 / denom
        p = e * inv                                                            # row softmax
        # P @ V for all heads; keep only each head's own channel block and fold back.
        att_all = jnp.dot(p, v, precision=precision,
                          preferred_element_type=jnp.float32)                  # (NH*BT, C)
        att = jnp.dot(sel_mat, att_all * head_mask, precision=precision,
                      preferred_element_type=jnp.float32)                      # (BT, C)
        x = x + jnp.dot(att, wproj[l], precision=precision,
                        preferred_element_type=jnp.float32) + bproj[l:l + 1]
        # ---- feed-forward (pre-LN, residual) ----
        h2 = _layer_norm(x, ln2_g[l:l + 1], ln2_b[l:l + 1])
        f = jnp.maximum(
            jnp.dot(h2, w1[l], precision=precision,
                    preferred_element_type=jnp.float32) + b1[l:l + 1], 0.0)
        x = x + jnp.dot(f, w2[l], precision=precision,
                        preferred_element_type=jnp.float32) + b2[l:l + 1]
    x = _layer_norm(x, lnf_g[0:1], lnf_b[0:1])
    return jnp.dot(x, wlm[...], precision=precision,
                   preferred_element_type=jnp.float32) + blm[0:1]


def transformer_kernel(ctx_ref, tok_ref, pos_ref,
                       rep_ref, hmask_ref, bias_ref, sel_ref,
                       ln1_g, ln1_b, wqkv, wproj, bproj,
                       ln2_g, ln2_b, w1, b1, w2, b2, lnf_g, lnf_b, wlm, blm,
                       out_ref, *, batch, seqlen):
    bt = batch * seqlen
    # Token-embedding gather as a one-hot MXU matmul (keeps the gather inside the kernel).
    onehot = (ctx_ref[...] ==
              jax.lax.broadcasted_iota(jnp.int32, (bt, VOCAB), 1)).astype(jnp.float32)
    x = jnp.dot(onehot, tok_ref[...], preferred_element_type=jnp.float32)      # (BT, C)
    x = x + pos_ref[...]                   # positional table pre-tiled to (BT, C) by wrapper
    out_ref[...] = _transformer_stack(
        x, rep_ref[...], hmask_ref[...], bias_ref[...], sel_ref[...],
        ln1_g, ln1_b, wqkv, wproj, bproj, ln2_g, ln2_b, w1, b1, w2, b2,
        lnf_g, lnf_b, wlm, blm, in_kernel=True)


def init_params(key):
    ks = jax.random.split(key, 9)

    def nrm(k, shape, scale=0.02):
        return scale * jax.random.normal(k, shape, dtype=jnp.float32)

    L, C, V, F = N_LAYERS, N_EMB, VOCAB, 4 * N_EMB
    return dict(
        tok_table=nrm(ks[0], (V, C)),
        pos_table=nrm(ks[1], (BLOCK_SIZE, C)),
        ln1_g=jnp.ones((L, C), jnp.float32),
        ln1_b=jnp.zeros((L, C), jnp.float32),
        wq=nrm(ks[2], (L, C, C)),
        wk=nrm(ks[3], (L, C, C)),
        wv=nrm(ks[4], (L, C, C)),
        wproj=nrm(ks[5], (L, C, C)),
        bproj=jnp.zeros((L, C), jnp.float32),
        ln2_g=jnp.ones((L, C), jnp.float32),
        ln2_b=jnp.zeros((L, C), jnp.float32),
        w1=nrm(ks[6], (L, C, F)),
        b1=jnp.zeros((L, F), jnp.float32),
        w2=nrm(ks[7], (L, F, C)),
        b2=jnp.zeros((L, C), jnp.float32),
        lnf_g=jnp.ones((1, C), jnp.float32),
        lnf_b=jnp.zeros((1, C), jnp.float32),
        wlm=nrm(ks[8], (C, V)),
        blm=jnp.zeros((1, V), jnp.float32),
    )


def _prep_params(params):
    """Kernel-friendly layout: fuse QKV (with 1/sqrt(head) folded into Q) and pad the
    lm_head to a lane-dense 128 output columns."""
    scale = HEAD ** -0.5
    wqkv = jnp.concatenate(
        [params["wq"] * scale, params["wk"], params["wv"]], axis=-1)           # (L, C, 3C)
    wlm_pad = jnp.pad(params["wlm"], ((0, 0), (0, VPAD - VOCAB)))
    blm_pad = jnp.pad(params["blm"], ((0, 0), (0, VPAD - VOCAB)))
    return [params["ln1_g"], params["ln1_b"], wqkv, params["wproj"], params["bproj"],
            params["ln2_g"], params["ln2_b"], params["w1"], params["b1"],
            params["w2"], params["b2"], params["lnf_g"], params["lnf_b"],
            wlm_pad, blm_pad]


def forward(context, params, targets=None):
    """Mirrors BigramAttentionModel.forward(context, targets)."""
    Bc, Tc = context.shape
    plist = _prep_params(params)
    consts = _attention_consts(Bc, Tc)
    ctx_flat = context.reshape(Bc * Tc, 1).astype(jnp.int32)
    pos_bt = jnp.tile(params["pos_table"][:Tc], (Bc, 1))                        # (B*T, C)
    vmem = pl.BlockSpec(memory_space=pltpu.MemorySpace.VMEM)
    n_in = 3 + len(consts) + len(plist)

    # Gridless single invocation: the whole ~160 KB problem is VMEM-resident with the batch
    # flattened into sublanes.  Per the perf review we intentionally do NOT split over
    # v7x's 2 TensorCores at this size (launch/latency bound); throughput should come from
    # packing more rows (larger B*T) into this same flattened call, which works as-is.
    logits_pad = pl.pallas_call(
        functools.partial(transformer_kernel, batch=Bc, seqlen=Tc),
        out_shape=jax.ShapeDtypeStruct((Bc * Tc, VPAD), jnp.float32),
        in_specs=[vmem] * n_in,
        out_specs=vmem,
    )(ctx_flat, params["tok_table"], pos_bt, *consts, *plist)

    logits = logits_pad[:, :VOCAB].reshape(Bc, Tc, VOCAB)
    loss = None
    if targets is not None:
        logp = jax.nn.log_softmax(logits.reshape(Bc * Tc, VOCAB), axis=-1)
        loss = -jnp.mean(jnp.take_along_axis(logp, targets.reshape(-1, 1), axis=1))
    return logits, loss


def forward_reference(context, params):
    """Pure-JAX reference (same math as the kernel, no Pallas, full-f32 matmuls)."""
    Bc, Tc = context.shape
    n = Bc * Tc
    hp = jax.lax.Precision.HIGHEST   # keep the XLA reference in true f32 (no bf16 passes)
    onehot = (context.reshape(n, 1) ==
              jnp.arange(VOCAB, dtype=jnp.int32)[None, :]).astype(jnp.float32)
    x = jnp.dot(onehot, params["tok_table"], precision=hp,
                preferred_element_type=jnp.float32)
    x = x + jnp.tile(params["pos_table"][:Tc], (Bc, 1))
    logits_pad = _transformer_stack(
        x, *_attention_consts(Bc, Tc), *_prep_params(params),
        in_kernel=False, precision=hp)
    return logits_pad[:, :VOCAB].reshape(Bc, Tc, VOCAB)


if __name__ == "__main__":
    key = jax.random.PRNGKey(0)
    k_params, k_ctx = jax.random.split(key)
    params = init_params(k_params)
    context = jax.random.randint(k_ctx, (B, T), 0, VOCAB, dtype=jnp.int32)

    logits, loss = forward(context, params, targets=None)
    logits = jax.block_until_ready(logits)
    assert loss is None
    assert logits.shape == (B, T, VOCAB) and logits.dtype == jnp.float32

    ref = jax.block_until_ready(forward_reference(context, params))
    np.testing.assert_allclose(np.asarray(logits), np.asarray(ref),
                               rtol=1e-4, atol=1e-4)
    print("KERNEL_OK")
</pallas_src>

<mosaic_0001>
module attributes {stable_mosaic.version = 11 : i64} {
  func.func @transformer_kernel(%arg0: memref<16x1xi32, #tpu.memory_space<vmem>>, %arg1: memref<64x32xf32, #tpu.memory_space<vmem>>, %arg2: memref<16x32xf32, #tpu.memory_space<vmem>>, %arg3: memref<64x16xf32, #tpu.memory_space<vmem>>, %arg4: memref<64x32xf32, #tpu.memory_space<vmem>>, %arg5: memref<64x16xf32, #tpu.memory_space<vmem>>, %arg6: memref<16x64xf32, #tpu.memory_space<vmem>>, %arg7: memref<2x32xf32, #tpu.memory_space<vmem>>, %arg8: memref<2x32xf32, #tpu.memory_space<vmem>>, %arg9: memref<2x32x96xf32, #tpu.memory_space<vmem>>, %arg10: memref<2x32x32xf32, #tpu.memory_space<vmem>>, %arg11: memref<2x32xf32, #tpu.memory_space<vmem>>, %arg12: memref<2x32xf32, #tpu.memory_space<vmem>>, %arg13: memref<2x32xf32, #tpu.memory_space<vmem>>, %arg14: memref<2x32x128xf32, #tpu.memory_space<vmem>>, %arg15: memref<2x128xf32, #tpu.memory_space<vmem>>, %arg16: memref<2x128x32xf32, #tpu.memory_space<vmem>>, %arg17: memref<2x32xf32, #tpu.memory_space<vmem>>, %arg18: memref<1x32xf32, #tpu.memory_space<vmem>>, %arg19: memref<1x32xf32, #tpu.memory_space<vmem>>, %arg20: memref<32x128xf32, #tpu.memory_space<vmem>>, %arg21: memref<1x128xf32, #tpu.memory_space<vmem>>, %arg22: memref<16x128xf32, #tpu.memory_space<vmem>>) attributes {dimension_semantics = [], scalar_prefetch = 0 : i64, scratch_operands = 0 : i64, tpu.core_type = #tpu.core_type<tc>} {
    %c0 = arith.constant 0 : index
    %c0_0 = arith.constant 0 : index
    %0 = vector.load %arg0[%c0, %c0_0] : memref<16x1xi32, #tpu.memory_space<vmem>>, vector<16x1xi32>
    %1 = tpu.iota {dimensions = array<i32: 1>} : vector<16x64xi32>
    %2 = vector.broadcast %0 : vector<16x1xi32> to vector<16x64xi32>
    %3 = arith.cmpi eq, %2, %1 : vector<16x64xi32>
    %4 = arith.extui %3 : vector<16x64xi1> to vector<16x64xi32>
    %5 = arith.sitofp %4 : vector<16x64xi32> to vector<16x64xf32>
    %c0_1 = arith.constant 0 : index
    %c0_2 = arith.constant 0 : index
    %6 = vector.load %arg1[%c0_1, %c0_2] : memref<64x32xf32, #tpu.memory_space<vmem>>, vector<64x32xf32>
    %cst = arith.constant dense<0.000000e+00> : vector<16x32xf32>
    %7 = tpu.matmul %5, %6, %cst {dimension_numbers = #tpu.dot_dimension_numbers<[1], [0], [0], [1], [0, 0, 1, 1], [], []>} : vector<16x64xf32>, vector<64x32xf32>, vector<16x32xf32> -> vector<16x32xf32>
    %c0_3 = arith.constant 0 : index
    %c0_4 = arith.constant 0 : index
    %8 = vector.load %arg2[%c0_3, %c0_4] : memref<16x32xf32, #tpu.memory_space<vmem>>, vector<16x32xf32>
    %9 = arith.addf %7, %8 : vector<16x32xf32>
    %c0_5 = arith.constant 0 : index
    %c0_6 = arith.constant 0 : index
    %10 = vector.load %arg3[%c0_5, %c0_6] : memref<64x16xf32, #tpu.memory_space<vmem>>, vector<64x16xf32>
    %c0_7 = arith.constant 0 : index
    %c0_8 = arith.constant 0 : index
    %11 = vector.load %arg4[%c0_7, %c0_8] : memref<64x32xf32, #tpu.memory_space<vmem>>, vector<64x32xf32>
    %c0_9 = arith.constant 0 : index
    %c0_10 = arith.constant 0 : index
    %12 = vector.load %arg5[%c0_9, %c0_10] : memref<64x16xf32, #tpu.memory_space<vmem>>, vector<64x16xf32>
    %c0_11 = arith.constant 0 : index
    %c0_12 = arith.constant 0 : index
    %13 = vector.load %arg6[%c0_11, %c0_12] : memref<16x64xf32, #tpu.memory_space<vmem>>, vector<16x64xf32>
    %c0_13 = arith.constant 0 : index
    %c0_14 = arith.constant 0 : index
    %14 = vector.load %arg7[%c0_13, %c0_14] : memref<2x32xf32, #tpu.memory_space<vmem>>, vector<1x32xf32>
    %c0_15 = arith.constant 0 : index
    %c0_16 = arith.constant 0 : index
    %15 = vector.load %arg8[%c0_15, %c0_16] : memref<2x32xf32, #tpu.memory_space<vmem>>, vector<1x32xf32>
    %cst_17 = arith.constant dense<0.000000e+00> : vector<16xf32>
    %16 = vector.multi_reduction <add>, %9, %cst_17 [1] : vector<16x32xf32> to vector<16xf32>
    %17 = vector.shape_cast %16 : vector<16xf32> to vector<16x1xf32>
    %cst_18 = arith.constant 3.200000e+01 : f32
    %18 = vector.broadcast %cst_18 : f32 to vector<16x1xf32>
    %19 = arith.divf %17, %18 : vector<16x1xf32>
    %20 = vector.broadcast %19 : vector<16x1xf32> to vector<16x32xf32>
    %21 = arith.subf %9, %20 : vector<16x32xf32>
    %22 = arith.mulf %21, %21 : vector<16x32xf32>
    %cst_19 = arith.constant dense<0.000000e+00> : vector<16xf32>
    %23 = vector.multi_reduction <add>, %22, %cst_19 [1] : vector<16x32xf32> to vector<16xf32>
    %24 = vector.shape_cast %23 : vector<16xf32> to vector<16x1xf32>
    %cst_20 = arith.constant 3.200000e+01 : f32
    %25 = vector.broadcast %cst_20 : f32 to vector<16x1xf32>
    %26 = arith.divf %24, %25 : vector<16x1xf32>
    %27 = vector.broadcast %19 : vector<16x1xf32> to vector<16x32xf32>
    %28 = arith.subf %9, %27 : vector<16x32xf32>
    %cst_21 = arith.constant 9.99999974E-6 : f32
    %29 = vector.broadcast %cst_21 : f32 to vector<16x1xf32>
    %30 = arith.addf %26, %29 : vector<16x1xf32>
    %31 = math.rsqrt %30 : vector<16x1xf32>
    %32 = vector.broadcast %31 : vector<16x1xf32> to vector<16x32xf32>
    %33 = arith.mulf %28, %32 : vector<16x32xf32>
    %34 = vector.broadcast %14 : vector<1x32xf32> to vector<16x32xf32>
    %35 = arith.mulf %33, %34 : vector<16x32xf32>
    %36 = vector.broadcast %15 : vector<1x32xf32> to vector<16x32xf32>
    %37 = arith.addf %35, %36 : vector<16x32xf32>
    %c0_22 = arith.constant 0 : index
    %c0_23 = arith.constant 0 : index
    %c0_24 = arith.constant 0 : index
    %38 = vector.load %arg9[%c0_22, %c0_23, %c0_24] : memref<2x32x96xf32, #tpu.memory_space<vmem>>, vector<1x32x96xf32>
    %39 = vector.shape_cast %38 : vector<1x32x96xf32> to vector<32x96xf32>
    %cst_25 = arith.constant dense<0.000000e+00> : vector<16x96xf32>
    %40 = tpu.matmul %37, %39, %cst_25 {dimension_numbers = #tpu.dot_dimension_numbers<[1], [0], [0], [1], [0, 0, 1, 1], [], []>} : vector<16x32xf32>, vector<32x96xf32>, vector<16x96xf32> -> vector<16x96xf32>
    %41 = vector.extract_strided_slice %40 {offsets = [0, 0], sizes = [16, 32], strides = [1, 1]} : vector<16x96xf32> to vector<16x32xf32>
    %42 = vector.extract_strided_slice %40 {offsets = [0, 32], sizes = [16, 32], strides = [1, 1]} : vector<16x96xf32> to vector<16x32xf32>
    %43 = vector.extract_strided_slice %40 {offsets = [0, 64], sizes = [16, 32], strides = [1, 1]} : vector<16x96xf32> to vector<16x32xf32>
    %cst_26 = arith.constant dense<0.000000e+00> : vector<64x32xf32>
    %44 = tpu.matmul %10, %41, %cst_26 {dimension_numbers = #tpu.dot_dimension_numbers<[1], [0], [0], [1], [0, 0, 1, 1], [], []>} : vector<64x16xf32>, vector<16x32xf32>, vector<64x32xf32> -> vector<64x32xf32>
    %45 = arith.mulf %44, %11 : vector<64x32xf32>
    %cst_27 = arith.constant dense<0.000000e+00> : vector<64x16xf32>
    %46 = tpu.matmul %45, %42, %cst_27 {dimension_numbers = #tpu.dot_dimension_numbers<[1], [1], [0], [0], [0, 0, 1, 0], [], []>} : vector<64x32xf32>, vector<16x32xf32>, vector<64x16xf32> -> vector<64x16xf32>
    %47 = arith.addf %46, %12 : vector<64x16xf32>
    %cst_28 = arith.constant dense<0xFF800000> : vector<64xf32>
    %48 = vector.multi_reduction <maximumf>, %47, %cst_28 [1] : vector<64x16xf32> to vector<64xf32>
    %49 = vector.shape_cast %48 : vector<64xf32> to vector<64x1xf32>
    %50 = vector.broadcast %49 : vector<64x1xf32> to vector<64x16xf32>
    %51 = arith.subf %47, %50 : vector<64x16xf32>
    %52 = math.exp %51 : vector<64x16xf32>
    %cst_29 = arith.constant dense<0.000000e+00> : vector<64xf32>
    %53 = vector.multi_reduction <add>, %52, %cst_29 [1] : vector<64x16xf32> to vector<64xf32>
    %54 = vector.shape_cast %53 : vector<64xf32> to vector<64x1xf32>
    %55 = tpu.reciprocal %54 : vector<64x1xf32> -> vector<64x1xf32>
    %56 = vector.broadcast %55 : vector<64x1xf32> to vector<64x16xf32>
    %57 = arith.mulf %52, %56 : vector<64x16xf32>
    %cst_30 = arith.constant dense<0.000000e+00> : vector<64x32xf32>
    %58 = tpu.matmul %57, %43, %cst_30 {dimension_numbers = #tpu.dot_dimension_numbers<[1], [0], [0], [1], [0, 0, 1, 1], [], []>} : vector<64x16xf32>, vector<16x32xf32>, vector<64x32xf32> -> vector<64x32xf32>
    %59 = arith.mulf %58, %11 : vector<64x32xf32>
    %cst_31 = arith.constant dense<0.000000e+00> : vector<16x32xf32>
    %60 = tpu.matmul %13, %59, %cst_31 {dimension_numbers = #tpu.dot_dimension_numbers<[1], [0], [0], [1], [0, 0, 1, 1], [], []>} : vector<16x64xf32>, vector<64x32xf32>, vector<16x32xf32> -> vector<16x32xf32>
    %c0_32 = arith.constant 0 : index
    %c0_33 = arith.constant 0 : index
    %c0_34 = arith.constant 0 : index
    %61 = vector.load %arg10[%c0_32, %c0_33, %c0_34] : memref<2x32x32xf32, #tpu.memory_space<vmem>>, vector<1x32x32xf32>
    %62 = vector.shape_cast %61 : vector<1x32x32xf32> to vector<32x32xf32>
    %cst_35 = arith.constant dense<0.000000e+00> : vector<16x32xf32>
    %63 = tpu.matmul %60, %62, %cst_35 {dimension_numbers = #tpu.dot_dimension_numbers<[1], [0], [0], [1], [0, 0, 1, 1], [], []>} : vector<16x32xf32>, vector<32x32xf32>, vector<16x32xf32> -> vector<16x32xf32>
    %64 = arith.addf %9, %63 : vector<16x32xf32>
    %c0_36 = arith.constant 0 : index
    %c0_37 = arith.constant 0 : index
    %65 = vector.load %arg11[%c0_36, %c0_37] : memref<2x32xf32, #tpu.memory_space<vmem>>, vector<1x32xf32>
    %66 = vector.broadcast %65 : vector<1x32xf32> to vector<16x32xf32>
    %67 = arith.addf %64, %66 : vector<16x32xf32>
    %c0_38 = arith.constant 0 : index
    %c0_39 = arith.constant 0 : index
    %68 = vector.load %arg12[%c0_38, %c0_39] : memref<2x32xf32, #tpu.memory_space<vmem>>, vector<1x32xf32>
    %c0_40 = arith.constant 0 : index
    %c0_41 = arith.constant 0 : index
    %69 = vector.load %arg13[%c0_40, %c0_41] : memref<2x32xf32, #tpu.memory_space<vmem>>, vector<1x32xf32>
    %cst_42 = arith.constant dense<0.000000e+00> : vector<16xf32>
    %70 = vector.multi_reduction <add>, %67, %cst_42 [1] : vector<16x32xf32> to vector<16xf32>
    %71 = vector.shape_cast %70 : vector<16xf32> to vector<16x1xf32>
    %cst_43 = arith.constant 3.200000e+01 : f32
    %72 = vector.broadcast %cst_43 : f32 to vector<16x1xf32>
    %73 = arith.divf %71, %72 : vector<16x1xf32>
    %74 = vector.broadcast %73 : vector<16x1xf32> to vector<16x32xf32>
    %75 = arith.subf %67, %74 : vector<16x32xf32>
    %76 = arith.mulf %75, %75 : vector<16x32xf32>
    %cst_44 = arith.constant dense<0.000000e+00> : vector<16xf32>
    %77 = vector.multi_reduction <add>, %76, %cst_44 [1] : vector<16x32xf32> to vector<16xf32>
    %78 = vector.shape_cast %77 : vector<16xf32> to vector<16x1xf32>
    %cst_45 = arith.constant 3.200000e+01 : f32
    %79 = vector.broadcast %cst_45 : f32 to vector<16x1xf32>
    %80 = arith.divf %78, %79 : vector<16x1xf32>
    %81 = vector.broadcast %73 : vector<16x1xf32> to vector<16x32xf32>
    %82 = arith.subf %67, %81 : vector<16x32xf32>
    %cst_46 = arith.constant 9.99999974E-6 : f32
    %83 = vector.broadcast %cst_46 : f32 to vector<16x1xf32>
    %84 = arith.addf %80, %83 : vector<16x1xf32>
    %85 = math.rsqrt %84 : vector<16x1xf32>
    %86 = vector.broadcast %85 : vector<16x1xf32> to vector<16x32xf32>
    %87 = arith.mulf %82, %86 : vector<16x32xf32>
    %88 = vector.broadcast %68 : vector<1x32xf32> to vector<16x32xf32>
    %89 = arith.mulf %87, %88 : vector<16x32xf32>
    %90 = vector.broadcast %69 : vector<1x32xf32> to vector<16x32xf32>
    %91 = arith.addf %89, %90 : vector<16x32xf32>
    %c0_47 = arith.constant 0 : index
    %c0_48 = arith.constant 0 : index
    %c0_49 = arith.constant 0 : index
    %92 = vector.load %arg14[%c0_47, %c0_48, %c0_49] : memref<2x32x128xf32, #tpu.memory_space<vmem>>, vector<1x32x128xf32>
    %93 = vector.shape_cast %92 : vector<1x32x128xf32> to vector<32x128xf32>
    %cst_50 = arith.constant dense<0.000000e+00> : vector<16x128xf32>
    %94 = tpu.matmul %91, %93, %cst_50 {dimension_numbers = #tpu.dot_dimension_numbers<[1], [0], [0], [1], [0, 0, 1, 1], [], []>} : vector<16x32xf32>, vector<32x128xf32>, vector<16x128xf32> -> vector<16x128xf32>
    %c0_51 = arith.constant 0 : index
    %c0_52 = arith.constant 0 : index
    %95 = vector.load %arg15[%c0_51, %c0_52] : memref<2x128xf32, #tpu.memory_space<vmem>>, vector<1x128xf32>
    %96 = vector.broadcast %95 : vector<1x128xf32> to vector<16x128xf32>
    %97 = arith.addf %94, %96 : vector<16x128xf32>
    %cst_53 = arith.constant 0.000000e+00 : f32
    %98 = vector.broadcast %cst_53 : f32 to vector<16x128xf32>
    %99 = arith.maximumf %97, %98 : vector<16x128xf32>
    %c0_54 = arith.constant 0 : index
    %c0_55 = arith.constant 0 : index
    %c0_56 = arith.constant 0 : index
    %100 = vector.load %arg16[%c0_54, %c0_55, %c0_56] : memref<2x128x32xf32, #tpu.memory_space<vmem>>, vector<1x128x32xf32>
    %101 = vector.shape_cast %100 : vector<1x128x32xf32> to vector<128x32xf32>
    %cst_57 = arith.constant dense<0.000000e+00> : vector<16x32xf32>
    %102 = tpu.matmul %99, %101, %cst_57 {dimension_numbers = #tpu.dot_dimension_numbers<[1], [0], [0], [1], [0, 0, 1, 1], [], []>} : vector<16x128xf32>, vector<128x32xf32>, vector<16x32xf32> -> vector<16x32xf32>
    %103 = arith.addf %67, %102 : vector<16x32xf32>
    %c0_58 = arith.constant 0 : index
    %c0_59 = arith.constant 0 : index
    %104 = vector.load %arg17[%c0_58, %c0_59] : memref<2x32xf32, #tpu.memory_space<vmem>>, vector<1x32xf32>
    %105 = vector.broadcast %104 : vector<1x32xf32> to vector<16x32xf32>
    %106 = arith.addf %103, %105 : vector<16x32xf32>
    %c1 = arith.constant 1 : index
    %c0_60 = arith.constant 0 : index
    %107 = vector.load %arg7[%c1, %c0_60] : memref<2x32xf32, #tpu.memory_space<vmem>>, vector<1x32xf32>
    %c1_61 = arith.constant 1 : index
    %c0_62 = arith.constant 0 : index
    %108 = vector.load %arg8[%c1_61, %c0_62] : memref<2x32xf32, #tpu.memory_space<vmem>>, vector<1x32xf32>
    %cst_63 = arith.constant dense<0.000000e+00> : vector<16xf32>
    %109 = vector.multi_reduction <add>, %106, %cst_63 [1] : vector<16x32xf32> to vector<16xf32>
    %110 = vector.shape_cast %109 : vector<16xf32> to vector<16x1xf32>
    %cst_64 = arith.constant 3.200000e+01 : f32
    %111 = vector.broadcast %cst_64 : f32 to vector<16x1xf32>
    %112 = arith.divf %110, %111 : vector<16x1xf32>
    %113 = vector.broadcast %112 : vector<16x1xf32> to vector<16x32xf32>
    %114 = arith.subf %106, %113 : vector<16x32xf32>
    %115 = arith.mulf %114, %114 : vector<16x32xf32>
    %cst_65 = arith.constant dense<0.000000e+00> : vector<16xf32>
    %116 = vector.multi_reduction <add>, %115, %cst_65 [1] : vector<16x32xf32> to vector<16xf32>
    %117 = vector.shape_cast %116 : vector<16xf32> to vector<16x1xf32>
    %cst_66 = arith.constant 3.200000e+01 : f32
    %118 = vector.broadcast %cst_66 : f32 to vector<16x1xf32>
    %119 = arith.divf %117, %118 : vector<16x1xf32>
    %120 = vector.broadcast %112 : vector<16x1xf32> to vector<16x32xf32>
    %121 = arith.subf %106, %120 : vector<16x32xf32>
    %cst_67 = arith.constant 9.99999974E-6 : f32
    %122 = vector.broadcast %cst_67 : f32 to vector<16x1xf32>
    %123 = arith.addf %119, %122 : vector<16x1xf32>
    %124 = math.rsqrt %123 : vector<16x1xf32>
    %125 = vector.broadcast %124 : vector<16x1xf32> to vector<16x32xf32>
    %126 = arith.mulf %121, %125 : vector<16x32xf32>
    %127 = vector.broadcast %107 : vector<1x32xf32> to vector<16x32xf32>
    %128 = arith.mulf %126, %127 : vector<16x32xf32>
    %129 = vector.broadcast %108 : vector<1x32xf32> to vector<16x32xf32>
    %130 = arith.addf %128, %129 : vector<16x32xf32>
    %c1_68 = arith.constant 1 : index
    %c0_69 = arith.constant 0 : index
    %c0_70 = arith.constant 0 : index
    %131 = vector.load %arg9[%c1_68, %c0_69, %c0_70] : memref<2x32x96xf32, #tpu.memory_space<vmem>>, vector<1x32x96xf32>
    %132 = vector.shape_cast %131 : vector<1x32x96xf32> to vector<32x96xf32>
    %cst_71 = arith.constant dense<0.000000e+00> : vector<16x96xf32>
    %133 = tpu.matmul %130, %132, %cst_71 {dimension_numbers = #tpu.dot_dimension_numbers<[1], [0], [0], [1], [0, 0, 1, 1], [], []>} : vector<16x32xf32>, vector<32x96xf32>, vector<16x96xf32> -> vector<16x96xf32>
    %134 = vector.extract_strided_slice %133 {offsets = [0, 0], sizes = [16, 32], strides = [1, 1]} : vector<16x96xf32> to vector<16x32xf32>
    %135 = vector.extract_strided_slice %133 {offsets = [0, 32], sizes = [16, 32], strides = [1, 1]} : vector<16x96xf32> to vector<16x32xf32>
    %136 = vector.extract_strided_slice %133 {offsets = [0, 64], sizes = [16, 32], strides = [1, 1]} : vector<16x96xf32> to vector<16x32xf32>
    %cst_72 = arith.constant dense<0.000000e+00> : vector<64x32xf32>
    %137 = tpu.matmul %10, %134, %cst_72 {dimension_numbers = #tpu.dot_dimension_numbers<[1], [0], [0], [1], [0, 0, 1, 1], [], []>} : vector<64x16xf32>, vector<16x32xf32>, vector<64x32xf32> -> vector<64x32xf32>
    %138 = arith.mulf %137, %11 : vector<64x32xf32>
    %cst_73 = arith.constant dense<0.000000e+00> : vector<64x16xf32>
    %139 = tpu.matmul %138, %135, %cst_73 {dimension_numbers = #tpu.dot_dimension_numbers<[1], [1], [0], [0], [0, 0, 1, 0], [], []>} : vector<64x32xf32>, vector<16x32xf32>, vector<64x16xf32> -> vector<64x16xf32>
    %140 = arith.addf %139, %12 : vector<64x16xf32>
    %cst_74 = arith.constant dense<0xFF800000> : vector<64xf32>
    %141 = vector.multi_reduction <maximumf>, %140, %cst_74 [1] : vector<64x16xf32> to vector<64xf32>
    %142 = vector.shape_cast %141 : vector<64xf32> to vector<64x1xf32>
    %143 = vector.broadcast %142 : vector<64x1xf32> to vector<64x16xf32>
    %144 = arith.subf %140, %143 : vector<64x16xf32>
    %145 = math.exp %144 : vector<64x16xf32>
    %cst_75 = arith.constant dense<0.000000e+00> : vector<64xf32>
    %146 = vector.multi_reduction <add>, %145, %cst_75 [1] : vector<64x16xf32> to vector<64xf32>
    %147 = vector.shape_cast %146 : vector<64xf32> to vector<64x1xf32>
    %148 = tpu.reciprocal %147 : vector<64x1xf32> -> vector<64x1xf32>
    %149 = vector.broadcast %148 : vector<64x1xf32> to vector<64x16xf32>
    %150 = arith.mulf %145, %149 : vector<64x16xf32>
    %cst_76 = arith.constant dense<0.000000e+00> : vector<64x32xf32>
    %151 = tpu.matmul %150, %136, %cst_76 {dimension_numbers = #tpu.dot_dimension_numbers<[1], [0], [0], [1], [0, 0, 1, 1], [], []>} : vector<64x16xf32>, vector<16x32xf32>, vector<64x32xf32> -> vector<64x32xf32>
    %152 = arith.mulf %151, %11 : vector<64x32xf32>
    %cst_77 = arith.constant dense<0.000000e+00> : vector<16x32xf32>
    %153 = tpu.matmul %13, %152, %cst_77 {dimension_numbers = #tpu.dot_dimension_numbers<[1], [0], [0], [1], [0, 0, 1, 1], [], []>} : vector<16x64xf32>, vector<64x32xf32>, vector<16x32xf32> -> vector<16x32xf32>
    %c1_78 = arith.constant 1 : index
    %c0_79 = arith.constant 0 : index
    %c0_80 = arith.constant 0 : index
    %154 = vector.load %arg10[%c1_78, %c0_79, %c0_80] : memref<2x32x32xf32, #tpu.memory_space<vmem>>, vector<1x32x32xf32>
    %155 = vector.shape_cast %154 : vector<1x32x32xf32> to vector<32x32xf32>
    %cst_81 = arith.constant dense<0.000000e+00> : vector<16x32xf32>
    %156 = tpu.matmul %153, %155, %cst_81 {dimension_numbers = #tpu.dot_dimension_numbers<[1], [0], [0], [1], [0, 0, 1, 1], [], []>} : vector<16x32xf32>, vector<32x32xf32>, vector<16x32xf32> -> vector<16x32xf32>
    %157 = arith.addf %106, %156 : vector<16x32xf32>
    %c1_82 = arith.constant 1 : index
    %c0_83 = arith.constant 0 : index
    %158 = vector.load %arg11[%c1_82, %c0_83] : memref<2x32xf32, #tpu.memory_space<vmem>>, vector<1x32xf32>
    %159 = vector.broadcast %158 : vector<1x32xf32> to vector<16x32xf32>
    %160 = arith.addf %157, %159 : vector<16x32xf32>
    %c1_84 = arith.constant 1 : index
    %c0_85 = arith.constant 0 : index
    %161 = vector.load %arg12[%c1_84, %c0_85] : memref<2x32xf32, #tpu.memory_space<vmem>>, vector<1x32xf32>
    %c1_86 = arith.constant 1 : index
    %c0_87 = arith.constant 0 : index
    %162 = vector.load %arg13[%c1_86, %c0_87] : memref<2x32xf32, #tpu.memory_space<vmem>>, vector<1x32xf32>
    %cst_88 = arith.constant dense<0.000000e+00> : vector<16xf32>
    %163 = vector.multi_reduction <add>, %160, %cst_88 [1] : vector<16x32xf32> to vector<16xf32>
    %164 = vector.shape_cast %163 : vector<16xf32> to vector<16x1xf32>
    %cst_89 = arith.constant 3.200000e+01 : f32
    %165 = vector.broadcast %cst_89 : f32 to vector<16x1xf32>
    %166 = arith.divf %164, %165 : vector<16x1xf32>
    %167 = vector.broadcast %166 : vector<16x1xf32> to vector<16x32xf32>
    %168 = arith.subf %160, %167 : vector<16x32xf32>
    %169 = arith.mulf %168, %168 : vector<16x32xf32>
    %cst_90 = arith.constant dense<0.000000e+00> : vector<16xf32>
    %170 = vector.multi_reduction <add>, %169, %cst_90 [1] : vector<16x32xf32> to vector<16xf32>
    %171 = vector.shape_cast %170 : vector<16xf32> to vector<16x1xf32>
    %cst_91 = arith.constant 3.200000e+01 : f32
    %172 = vector.broadcast %cst_91 : f32 to vector<16x1xf32>
    %173 = arith.divf %171, %172 : vector<16x1xf32>
    %174 = vector.broadcast %166 : vector<16x1xf32> to vector<16x32xf32>
    %175 = arith.subf %160, %174 : vector<16x32xf32>
    %cst_92 = arith.constant 9.99999974E-6 : f32
    %176 = vector.broadcast %cst_92 : f32 to vector<16x1xf32>
    %177 = arith.addf %173, %176 : vector<16x1xf32>
    %178 = math.rsqrt %177 : vector<16x1xf32>
    %179 = vector.broadcast %178 : vector<16x1xf32> to vector<16x32xf32>
    %180 = arith.mulf %175, %179 : vector<16x32xf32>
    %181 = vector.broadcast %161 : vector<1x32xf32> to vector<16x32xf32>
    %182 = arith.mulf %180, %181 : vector<16x32xf32>
    %183 = vector.broadcast %162 : vector<1x32xf32> to vector<16x32xf32>
    %184 = arith.addf %182, %183 : vector<16x32xf32>
    %c1_93 = arith.constant 1 : index
    %c0_94 = arith.constant 0 : index
    %c0_95 = arith.constant 0 : index
    %185 = vector.load %arg14[%c1_93, %c0_94, %c0_95] : memref<2x32x128xf32, #tpu.memory_space<vmem>>, vector<1x32x128xf32>
    %186 = vector.shape_cast %185 : vector<1x32x128xf32> to vector<32x128xf32>
    %cst_96 = arith.constant dense<0.000000e+00> : vector<16x128xf32>
    %187 = tpu.matmul %184, %186, %cst_96 {dimension_numbers = #tpu.dot_dimension_numbers<[1], [0], [0], [1], [0, 0, 1, 1], [], []>} : vector<16x32xf32>, vector<32x128xf32>, vector<16x128xf32> -> vector<16x128xf32>
    %c1_97 = arith.constant 1 : index
    %c0_98 = arith.constant 0 : index
    %188 = vector.load %arg15[%c1_97, %c0_98] : memref<2x128xf32, #tpu.memory_space<vmem>>, vector<1x128xf32>
    %189 = vector.broadcast %188 : vector<1x128xf32> to vector<16x128xf32>
    %190 = arith.addf %187, %189 : vector<16x128xf32>
    %cst_99 = arith.constant 0.000000e+00 : f32
    %191 = vector.broadcast %cst_99 : f32 to vector<16x128xf32>
    %192 = arith.maximumf %190, %191 : vector<16x128xf32>
    %c1_100 = arith.constant 1 : index
    %c0_101 = arith.constant 0 : index
    %c0_102 = arith.constant 0 : index
    %193 = vector.load %arg16[%c1_100, %c0_101, %c0_102] : memref<2x128x32xf32, #tpu.memory_space<vmem>>, vector<1x128x32xf32>
    %194 = vector.shape_cast %193 : vector<1x128x32xf32> to vector<128x32xf32>
    %cst_103 = arith.constant dense<0.000000e+00> : vector<16x32xf32>
    %195 = tpu.matmul %192, %194, %cst_103 {dimension_numbers = #tpu.dot_dimension_numbers<[1], [0], [0], [1], [0, 0, 1, 1], [], []>} : vector<16x128xf32>, vector<128x32xf32>, vector<16x32xf32> -> vector<16x32xf32>
    %196 = arith.addf %160, %195 : vector<16x32xf32>
    %c1_104 = arith.constant 1 : index
    %c0_105 = arith.constant 0 : index
    %197 = vector.load %arg17[%c1_104, %c0_105] : memref<2x32xf32, #tpu.memory_space<vmem>>, vector<1x32xf32>
    %198 = vector.broadcast %197 : vector<1x32xf32> to vector<16x32xf32>
    %199 = arith.addf %196, %198 : vector<16x32xf32>
    %c0_106 = arith.constant 0 : index
    %c0_107 = arith.constant 0 : index
    %200 = vector.load %arg18[%c0_106, %c0_107] : memref<1x32xf32, #tpu.memory_space<vmem>>, vector<1x32xf32>
    %c0_108 = arith.constant 0 : index
    %c0_109 = arith.constant 0 : index
    %201 = vector.load %arg19[%c0_108, %c0_109] : memref<1x32xf32, #tpu.memory_space<vmem>>, vector<1x32xf32>
    %cst_110 = arith.constant dense<0.000000e+00> : vector<16xf32>
    %202 = vector.multi_reduction <add>, %199, %cst_110 [1] : vector<16x32xf32> to vector<16xf32>
    %203 = vector.shape_cast %202 : vector<16xf32> to vector<16x1xf32>
    %cst_111 = arith.constant 3.200000e+01 : f32
    %204 = vector.broadcast %cst_111 : f32 to vector<16x1xf32>
    %205 = arith.divf %203, %204 : vector<16x1xf32>
    %206 = vector.broadcast %205 : vector<16x1xf32> to vector<16x32xf32>
    %207 = arith.subf %199, %206 : vector<16x32xf32>
    %208 = arith.mulf %207, %207 : vector<16x32xf32>
    %cst_112 = arith.constant dense<0.000000e+00> : vector<16xf32>
    %209 = vector.multi_reduction <add>, %208, %cst_112 [1] : vector<16x32xf32> to vector<16xf32>
    %210 = vector.shape_cast %209 : vector<16xf32> to vector<16x1xf32>
    %cst_113 = arith.constant 3.200000e+01 : f32
    %211 = vector.broadcast %cst_113 : f32 to vector<16x1xf32>
    %212 = arith.divf %210, %211 : vector<16x1xf32>
    %213 = vector.broadcast %205 : vector<16x1xf32> to vector<16x32xf32>
    %214 = arith.subf %199, %213 : vector<16x32xf32>
    %cst_114 = arith.constant 9.99999974E-6 : f32
    %215 = vector.broadcast %cst_114 : f32 to vector<16x1xf32>
    %216 = arith.addf %212, %215 : vector<16x1xf32>
    %217 = math.rsqrt %216 : vector<16x1xf32>
    %218 = vector.broadcast %217 : vector<16x1xf32> to vector<16x32xf32>
    %219 = arith.mulf %214, %218 : vector<16x32xf32>
    %220 = vector.broadcast %200 : vector<1x32xf32> to vector<16x32xf32>
    %221 = arith.mulf %219, %220 : vector<16x32xf32>
    %222 = vector.broadcast %201 : vector<1x32xf32> to vector<16x32xf32>
    %223 = arith.addf %221, %222 : vector<16x32xf32>
    %c0_115 = arith.constant 0 : index
    %c0_116 = arith.constant 0 : index
    %224 = vector.load %arg20[%c0_115, %c0_116] : memref<32x128xf32, #tpu.memory_space<vmem>>, vector<32x128xf32>
    %cst_117 = arith.constant dense<0.000000e+00> : vector<16x128xf32>
    %225 = tpu.matmul %223, %224, %cst_117 {dimension_numbers = #tpu.dot_dimension_numbers<[1], [0], [0], [1], [0, 0, 1, 1], [], []>} : vector<16x32xf32>, vector<32x128xf32>, vector<16x128xf32> -> vector<16x128xf32>
    %c0_118 = arith.constant 0 : index
    %c0_119 = arith.constant 0 : index
    %226 = vector.load %arg21[%c0_118, %c0_119] : memref<1x128xf32, #tpu.memory_space<vmem>>, vector<1x128xf32>
    %227 = vector.broadcast %226 : vector<1x128xf32> to vector<16x128xf32>
    %228 = arith.addf %225, %227 : vector<16x128xf32>
    %c0_120 = arith.constant 0 : index
    %c0_121 = arith.constant 0 : index
    %229 = vector.load %arg22[%c0_120, %c0_121] : memref<16x128xf32, #tpu.memory_space<vmem>>, vector<16x128xf32>
    tpu.vector_store %arg22[%c0_120, %c0_121], %228 {strides = array<i32>} : memref<16x128xf32, #tpu.memory_space<vmem>>, vector<16x128xf32>,
    return
  }
}

</mosaic_0001>

<bundles_post_ra>
// kernel: tpu_custom_call.1
= control target key start
LH: loop header
LB: loop body
LE: loop exit
PB: predicated region body
PF: predicated region fallthrough
CT: control target
= control target key end

     0   :  { %s4177_s0 = inlined_call_operand.vmem [shape: s32[16,1], index: 0, kind: input, shape index: {}]   ;;  %s4178_s1 = inlined_call_operand.vmem [shape: f32[64,32], index: 1, kind: input, shape index: {}]   ;;  %s4179_s2 = inlined_call_operand.vmem [shape: f32[16,32], index: 2, kind: input, shape index: {}]   ;;  %s4180_s3 = inlined_call_operand.vmem [shape: f32[64,16], index: 3, kind: input, shape index: {}]   ;;  %s4181_s4 = inlined_call_operand.vmem [shape: f32[64,32], index: 4, kind: input, shape index: {}]   ;;  %s4182_s5 = inlined_call_operand.vmem [shape: f32[64,16], index: 5, kind: input, shape index: {}]   ;;  %s4183_s6 = inlined_call_operand.vmem [shape: f32[16,64], index: 6, kind: input, shape index: {}]   ;;  %s4184_s7 = inlined_call_operand.vmem [shape: f32[2,32], index: 7, kind: input, shape index: {}]   ;;  %s4185_s8 = inlined_call_operand.vmem [shape: f32[2,32], index: 8, kind: input, shape index: {}]   ;;  %s4186_s9 = inlined_call_operand.vmem [shape: f32[2,32,96], index: 9, kind: input, shape index: {}]   ;;  %s4187_s10 = inlined_call_operand.vmem [shape: f32[2,32,32], index: 10, kind: input, shape index: {}]   ;;  %s4188_s11 = inlined_call_operand.vmem [shape: f32[2,32], index: 11, kind: input, shape index: {}]   ;;  %s4189_s12 = inlined_call_operand.vmem [shape: f32[2,32], index: 12, kind: input, shape index: {}]   ;;  %s4190_s13 = inlined_call_operand.vmem [shape: f32[2,32], index: 13, kind: input, shape index: {}]   ;;  %s4191_s14 = inlined_call_operand.vmem [shape: f32[2,32,128], index: 14, kind: input, shape index: {}]   ;;  %s4192_s15 = inlined_call_operand.vmem [shape: f32[2,128], index: 15, kind: input, shape index: {}]   ;;  %s4193_s16 = inlined_call_operand.vmem [shape: f32[2,128,32], index: 16, kind: input, shape index: {}]   ;;  %s4194_s17 = inlined_call_operand.vmem [shape: f32[2,32], index: 17, kind: input, shape index: {}]   ;;  %s4195_s18 = inlined_call_operand.vmem [shape: f32[1,32], index: 18, kind: input, shape index: {}]   ;;  %s4196_s19 = inlined_call_operand.vmem [shape: f32[1,32], index: 19, kind: input, shape index: {}]   ;;  %s4197_s20 = inlined_call_operand.vmem [shape: f32[32,128], index: 20, kind: input, shape index: {}]   ;;  %s4198_s21 = inlined_call_operand.vmem [shape: f32[1,128], index: 21, kind: input, shape index: {}]   ;;  %s4199_s22 = inlined_call_operand.hbm [shape: f32[16,128], index: 22, kind: output, shape index: {}]  }
   0x1   :  { %4208 = sst [smem:[#allocation5_spill]] %s4177_s0 }
   0x2   :  { %4209 = sst [smem:[#allocation6_spill]] %s4178_s1 }
   0x3   :  { %4210 = sst [smem:[#allocation7_spill]] %s4179_s2 }
   0x4   :  { %4211 = sst [smem:[#allocation8_spill]] %s4180_s3 }
   0x5   :  { %4212 = sst [smem:[#allocation9_spill]] %s4181_s4 }
   0x6   :  { %4213 = sst [smem:[#allocation10_spill]] %s4182_s5 }
   0x7   :  { %4214 = sst [smem:[#allocation11_spill]] %s4183_s6 }
   0x8   :  { %4215 = sst [smem:[#allocation12_spill]] %s4194_s17 }
   0x9   :  { %s4216_s29 = sld [smem:[#allocation5_spill]]  ;;  %s4217_s17 = sld [smem:[#allocation6_spill]]  ;;  %v3344_v2 = vmov 0  }
   0xa   :  { %3207 = vset.pattern.permute.xlu0 %v3344_v2 }
   0xf   :  { %v72_v0 = vld [vmem:[%s4216_s29] sm:$0xff]  ;;  %v89_v3 = vld [vmem:[%s4217_s17 + $0x8] sm:$0xff]  ;;  %v90_v4 = vld [vmem:[%s4217_s17 + $0x10] sm:$0xff] }
  0x10   :  { %v88_v1 = vld [vmem:[%s4217_s17] sm:$0xff]  ;;  %v91_v5 = vld [vmem:[%s4217_s17 + $0x18] sm:$0xff]  ;;  %77 = vperm.xlu0 %3207, %v72_v0   ;;  %v73_v6 = vld [vmem:[%s4216_s29 + $0x8] sm:$0xff] }
  0x11   :  { %v3002_v7 = vpack.c.bf16 %v89_v3, %v88_v1  ;;  %v3006_v8 = vpack.c.bf16 %v91_v5, %v90_v4  ;;  %v92_v9 = vld [vmem:[%s4217_s17 + $0x20] sm:$0xff]  ;;  %v93_v10 = vld [vmem:[%s4217_s17 + $0x28] sm:$0xff] }
  0x12   :  { %27 = vsyncpa [#allocation3], 0  ;;  %v3010_v11 = vpack.c.bf16 %v93_v10, %v92_v9  ;;  %v94_v12 = vld [vmem:[%s4217_s17 + $0x30] sm:$0xff]  ;;  %v95_v13 = vld [vmem:[%s4217_s17 + $0x38] sm:$0xff]  ;;  %v74_v15 = vlaneseq  ;;  %vm98_vm0 = vcmask 523264   ;;  %v3345_v18 = vmov 0.0  }
  0x13   :  { %3003 = vmatprep.subr.bf16.mxu0 %v3002_v7  ;;  %v3014_v14 = vpack.c.bf16 %v95_v13, %v94_v12  ;;  %s4218_s1 = sld [smem:[#allocation7_spill]]  ;;  %vm208_vm3 = vcmask 261120   ;;  %v248_v40 = vld [vmem:[%s4186_s9] sm:$0xff]  ;;  %v249_v41 = vld [vmem:[%s4186_s9 + $0x8] sm:$0xff]  ;;  %v250_v42 = vld [vmem:[%s4186_s9 + $0x10] sm:$0xff]  ;;  %s4219_s5 = sld [smem:[#allocation8_spill]] }
  0x14   :  { %3005 = vmatpush3.bf16.msra.mxu0 %v3002_v7  ;;  %80 = vperm.xlu0 %3207, %v73_v6   ;;  %v75_v16 = vand.u32 127, %v74_v15  ;;  %v3018_v43 = vpack.c.bf16 %v249_v41, %v248_v40  ;;  %v251_v44 = vld [vmem:[%s4186_s9 + $0x18] sm:$0xff]  ;;  %v2419_v53 = vld [vmem:[%s4184_s7] ss:$0 sm:$0xff]  ;;  %vm333_vm4 = vcmask 130048   ;;  %s3346_s25 = smov 96   ;;  %vm3598_vm5 = vmpackc.low %vm208_vm3, %vm208_vm3 }
  0x15   :  { %3007 = vmatprep.subr.bf16.mxu0 %v3006_v8  ;;  %v3022_v45 = vpack.c.bf16 %v251_v44, %v250_v42  ;;  %v2420_v55 = vld [vmem:[%s4185_s8] ss:$0 sm:$0xff]  ;;  %s4222_s6 = sld [smem:[#allocation9_spill]]  ;;  %s4223_s27 = sld [smem:[#allocation10_spill]] }
  0x16   :  { %3019 = vmatprep.subr.bf16.mxu1 %v3018_v43  ;;  %s4224_s4 = sld [smem:[#allocation11_spill]]  ;;  %s4225_s2 = sld [smem:[#allocation12_spill]] }
  0x17   :  { %3021 = vmatpush3.bf16.msra.mxu1 %v3018_v43 }
  0x18   :  { %3009 = vmatpush3.bf16.msra.mxu0 %v3006_v8  ;;  %3023 = vmatprep.subr.bf16.mxu1 %v3022_v45 }
  0x19   :  { %3011 = vmatprep.subr.bf16.mxu0 %v3010_v11  ;;  %v96_v22 = vld [vmem:[%s4218_s1] sm:$0xff]  ;;  %v97_v24 = vld [vmem:[%s4218_s1 + $0x8] sm:$0xff]  ;;  %v3546_v63 = vld [vmem:[%s4219_s5 + $0x30] sm:$0xff] }
  0x1a   :  { %v3539_v62 = vld [vmem:[%s4219_s5] sm:$0xff]  ;;  %v3557_v4 = vld [vmem:[%s4219_s5 + $0x8] sm:$0xff]  ;;  %v3562_v5 = vld [vmem:[%s4219_s5 + $0x10] sm:$0xff] }
  0x1b   :  { %3025 = vmatpush3.bf16.msra.mxu1 %v3022_v45  ;;  %v3567_v6 = vld [vmem:[%s4219_s5 + $0x38] sm:$0xff]  ;;  %v3583_v8 = vld [vmem:[%s4219_s5 + $0x20] sm:$0xff]  ;;  %v3592_v9 = vld [vmem:[%s4219_s5 + $0x28] sm:$0xff] }
  0x1c   :  { %3013 = vmatpush3.bf16.msra.mxu0 %v3010_v11  ;;  %v3576_v7 = vld [vmem:[%s4219_s5 + $0x18] sm:$0xff]  ;;  %v3609_v15 = vld [vmem:[%s4222_s6] sm:$0xff]  ;;  %v3665_v41 = vld [vmem:[%s4223_s27 + $0x8] sm:$0xff] }
  0x1d   :  { %3015 = vmatprep.subr.bf16.mxu0 %v3014_v14  ;;  %v3670_v42 = vld [vmem:[%s4223_s27] sm:$0xff] }
  0x20   :  { %3017 = vmatpush3.bf16.msra.mxu0 %v3014_v14 }
  0x8f   :  { %v78_v17 = vpop.permute.xlu0 %77 }
  0x90   :  { %vm82_vm1 = vcmp.eq.s32.totalorder %v78_v17, %v75_v16 }
  0x91   :  { %v2415_v19 = vsel %vm82_vm1, 1.0, %v3345_v18 }
  0x92   :  { %2718 = vmatprep.mubr.msk.f32.mxu0 %vm98_vm0, %v2415_v19 }
  0x93   :  { %v81_v20 = vpop.permute.xlu0 %80 }
  0x94   :  { %vm83_vm2 = vcmp.eq.s32.totalorder %v81_v20, %v75_v16  ;;  %v3614_v16 = vld [vmem:[%s4222_s6 + $0x8] sm:$0xff] }
  0x95   :  { %v2416_v21 = vsel %vm83_vm2, 1.0, %v3345_v18 }
  0x96   :  { %2719 = vmatmul.mubr.msk.f32.vlgmr.msra.gmra.mrb[0].mxu0 %vm98_vm0, %v2416_v21 }
  0x97   :  { %2736 = vmatprep.mubr.msk.f32.mxu0 %vm333_vm4, %v3539_v62 }
 0x169   :  { %v2720_v23 = vpop.f32.mrb[0].mxu0 }
 0x16a   :  { %v171_v25 = vpop.f32.mrb[1].mxu0  ;;  %v3506_v27 = vadd.f32 %v2720_v23, %v97_v24  ;;  %v3621_v23 = vld [vmem:[%s4222_s6 + $0x10] sm:$0xff]  ;;  %v3626_v24 = vld [vmem:[%s4222_s6 + $0x18] sm:$0xff] }
 0x16b   :  { %v3504_v26 = vadd.f32 %v171_v25, %v96_v22 }
 0x16c   :  { %v212_v29 = vsel %vm208_vm3, %v3506_v27, 0.0 }
 0x16d   :  { %v209_v28 = vsel %vm208_vm3, %v3504_v26, 0.0 }
 0x16e   :  { %210 = vadd.xlane.f32.xlu1 %v209_v28 }
 0x172   :  { %213 = vadd.xlane.f32.xlu1 %v212_v29 }
 0x1fb   :  { %v211_v30 = vpop.xlane.xlu1 %210 }
 0x1fc   :  { %v216_v31 = vmul.f32 0.03125, %v211_v30  ;;  %v3634_v30 = vld [vmem:[%s4222_s6 + $0x28] sm:$0xff] }
 0x1fe   :  { %v218_v32 = vsub.f32 %v3504_v26, %v216_v31 }
 0x1ff   :  { %v214_v33 = vpop.xlane.xlu1 %213 }
 0x200   :  { %v217_v34 = vmul.f32 0.03125, %v214_v33  ;;  %v220_v35 = vmul.f32 %v218_v32, %v218_v32  ;;  %v3645_v33 = vld [vmem:[%s4222_s6 + $0x30] sm:$0xff] }
 0x202   :  { %v219_v36 = vsub.f32 %v3506_v27, %v217_v34  ;;  %v222_v37 = vsel %vm208_vm3, %v220_v35, 0.0 }
 0x203   :  { %223 = vadd.xlane.f32.xlu0 %v222_v37 }
 0x204   :  { %v221_v38 = vmul.f32 %v219_v36, %v219_v36 }
 0x206   :  { %v225_v39 = vsel %vm208_vm3, %v221_v38, 0.0  ;;  %v3654_v38 = vld [vmem:[%s4222_s6 + $0x38] sm:$0xff] }
 0x207   :  { %226 = vadd.xlane.f32.xlu1 %v225_v39 }
 0x290   :  { %v224_v46 = vpop.xlane.xlu0 %223 }
 0x291   :  { %v228_v47 = vmul.f32 0.03125, %v224_v46 }
 0x293   :  { %v230_v48 = vadd.f32 1e-05, %v228_v47  ;;  %v3677_v47 = vld [vmem:[%s4223_s27 + $0x18] sm:$0xff] }
 0x294   :  { %v227_v49 = vpop.xlane.xlu1 %226 }
 0x295   :  { %3228 = vrsqrt.f32 %v230_v48  ;;  %v229_v50 = vmul.f32 0.03125, %v227_v49 }
 0x297   :  { %v231_v51 = vadd.f32 1e-05, %v229_v50  ;;  %v3683_v50 = vld [vmem:[%s4223_s27 + $0x10] sm:$0xff] }
 0x299   :  { %3230 = vrsqrt.f32 %v231_v51 }
 0x29f   :  { %v3229_v52 = vpop.eup %3228 }
 0x2a0   :  { %v234_v54 = vmul.f32 %v3229_v52, %v218_v32  ;;  %v3640_v32 = vld [vmem:[%s4222_s6 + $0x20] sm:$0xff] }
 0x2a2   :  { %v240_v56 = vmul.f32 %v2419_v53, %v234_v54 }
 0x2a3   :  { %v3231_v57 = vpop.eup %3230 }
 0x2a4   :  { %v235_v58 = vmul.f32 %v3231_v57, %v219_v36  ;;  %v246_v59 = vadd.f32 %v2420_v55, %v240_v56  ;;  %v3692_v56 = vld [vmem:[%s4223_s27 + $0x28] sm:$0xff] }
 0x2a6   :  { %v241_v60 = vmul.f32 %v2419_v53, %v235_v58  ;;  %2729 = vmatprep.mubr.msk.f32.mxu1 %vm208_vm3, %v246_v59 }
 0x2a8   :  { %v247_v61 = vadd.f32 %v2420_v55, %v241_v60 }
 0x2aa   :  { %2730 = vmatmul.mubr.msk.f32.vlgmr.msra.gmra.mrb[0].mxu1 %vm208_vm3, %v247_v61  ;;  %v3699_v61 = vld [vmem:[%s4223_s27 + $0x20] sm:$0xff] }
 0x2ab   :  { %2745 = vmatprep.mubr.msk.f32.mxu1 %vm333_vm4, %v3546_v63 }
 0x37d   :  { %v2731_v0 = vpop.f32.mrb[0].mxu1 }
 0x37e   :  { %v324_v1 = vpop.f32.mrb[1].mxu1 }
 0x37f   :  { %v3550_v2 = vpack.i.bf16 %v2731_v0, %v324_v1  ;;  %v3026_v3 = vpack.c.bf16 %v2731_v0, %v324_v1 }
 0x381   :  { %3209 = vrot.lane.b32.xlu1 %v3550_v2, %s3346_s25  ;;  %3027 = vmatprep.subr.bf16.mxu0 %v3026_v3 }
 0x382   :  { %3198 = vmatprep.subr.bf16.mxu1 %v3026_v3  ;;  %3029 = vmatpush3.bf16.msra.mxu0 %v3026_v3 }
 0x383   :  { %3199 = vmatpush3.bf16.msra.mxu1 %v3026_v3 }
 0x385   :  { %2737 = vmatmul.mubr.msk.f32.vlgmr.msra.gmra.mrb[2].mxu0 %vm333_vm4, %v3557_v4 }
 0x386   :  { %2739 = vmatprep.mubr.msk.f32.mxu0 %vm333_vm4, %v3562_v5  ;;  %2746 = vmatmul.mubr.msk.f32.vlgmr.msra.gmra.mrb[2].mxu1 %vm333_vm4, %v3567_v6 }
 0x389   :  { %2740 = vmatmul.mubr.msk.f32.gmra.mrb[4].mxu0 %vm333_vm4, %v3576_v7 }
 0x38a   :  { %2742 = vmatprep.mubr.msk.f32.mxu0 %vm333_vm4, %v3583_v8 }
 0x38d   :  { %2743 = vmatmul.mubr.msk.f32.gmra.mrb[6].mxu0 %vm333_vm4, %v3592_v9 }
 0x3f3   :  { %v3210_v10 = vpop.permute.xlu1 %3209 }
 0x3f4   :  { %v3212_v11 = vunpack.i.h.bf16 %v3210_v10  ;;  %v3211_v12 = vunpack.i.l.bf16 %v3210_v10 }
 0x3f6   :  { %v3030_v14 = vpack.c.bf16 %v3212_v11, %v3211_v12  ;;  %v3706_v11 = vld [vmem:[%s4223_s27 + $0x30] sm:$0xff] }
 0x3f8   :  { %3032 = vmatprep.subr.msk.bf16.mxu0 %vm3598_vm5, %v3030_v14 }
 0x3f9   :  { %3035 = vmatpush3.bf16.xpose.msk.msra.mxu0 %vm3598_vm5, %v3030_v14 }
 0x458   :  { %v2738_v17 = vpop.f32.mrb[2].mxu0 }
 0x459   :  { %v424_v18 = vpop.f32.mrb[3].mxu0  ;;  %v2747_v19 = vpop.f32.mrb[2].mxu1  ;;  %v464_v22 = vmul.f32 %v2738_v17, %v3614_v16  ;;  %v3713_v17 = vld [vmem:[%s4223_s27 + $0x38] sm:$0xff]  ;;  %s3347_s27 = smov 64  }
 0x45a   :  { %v463_v20 = vmul.f32 %v424_v18, %v3609_v15  ;;  %v454_v21 = vpop.f32.mrb[3].mxu1  ;;  %v470_v40 = vmul.f32 %v2747_v19, %v3654_v38 }
 0x45b   :  { %v469_v39 = vmul.f32 %v454_v21, %v3645_v33 }
 0x45c   :  { %v2741_v25 = vpop.f32.mrb[4].mxu0  ;;  %2752 = vmatprep.mubr.msk.f32.mxu0 %vm208_vm3, %v463_v20 }
 0x45d   :  { %v434_v28 = vpop.f32.mrb[5].mxu0  ;;  %2753 = vmatmul.mubr.msk.f32.vlgmr.msra.gmra.mrb[8].mxu0 %vm208_vm3, %v464_v22  ;;  %v466_v31 = vmul.f32 %v2741_v25, %v3626_v24 }
 0x45e   :  { %v465_v29 = vmul.f32 %v434_v28, %v3621_v23 }
 0x460   :  { %2755 = vmatprep.mubr.msk.f32.mxu0 %vm208_vm3, %v465_v29  ;;  %v2744_v34 = vpop.f32.mrb[6].mxu0 }
 0x461   :  { %v468_v35 = vmul.f32 %v2744_v34, %v3634_v30  ;;  %2756 = vmatmul.mubr.msk.f32.gmra.mrb[10].mxu0 %vm208_vm3, %v466_v31  ;;  %v444_v36 = vpop.f32.mrb[7].mxu0 }
 0x462   :  { %v467_v37 = vmul.f32 %v444_v36, %v3640_v32 }
 0x464   :  { %2758 = vmatprep.mubr.msk.f32.mxu0 %vm208_vm3, %v467_v37 }
 0x465   :  { %2759 = vmatmul.mubr.msk.f32.gmra.mrb[12].mxu0 %vm208_vm3, %v468_v35 }
 0x466   :  { %2761 = vmatprep.mubr.msk.f32.mxu0 %vm208_vm3, %v469_v39 }
 0x469   :  { %2762 = vmatmul.mubr.msk.f32.gmra.mrb[14].mxu0 %vm208_vm3, %v470_v40 }
 0x530   :  { %v2754_v43 = vpop.f32.mrb[8].mxu0 }
 0x531   :  { %v577_v44 = vadd.f32 %v2754_v43, %v3665_v41  ;;  %v571_v45 = vpop.f32.mrb[9].mxu0 }
 0x532   :  { %v572_v46 = vadd.f32 %v571_v45, %v3670_v42 }
 0x533   :  { %v613_v48 = vsel %vm333_vm4, %v577_v44, -inf }
 0x534   :  { %614 = vmax.xlane.f32.xlu0 %v613_v48  ;;  %v2757_v49 = vpop.f32.mrb[10].mxu0  ;;  %v610_v51 = vsel %vm333_vm4, %v572_v46, -inf }
 0x535   :  { %v587_v52 = vadd.f32 %v2757_v49, %v3677_v47  ;;  %v581_v53 = vpop.f32.mrb[11].mxu0  ;;  %611 = vmax.xlane.f32.xlu1 %v610_v51 }
 0x536   :  { %v582_v54 = vadd.f32 %v581_v53, %v3683_v50 }
 0x537   :  { %v619_v55 = vsel %vm333_vm4, %v587_v52, -inf }
 0x538   :  { %620 = vmax.xlane.f32.xlu0 %v619_v55  ;;  %v2760_v57 = vpop.f32.mrb[12].mxu0  ;;  %v616_v60 = vsel %vm333_vm4, %v582_v54, -inf }
 0x539   :  { %v591_v58 = vpop.f32.mrb[13].mxu0  ;;  %v597_v59 = vadd.f32 %v2760_v57, %v3692_v56 }
 0x53a   :  { %v592_v3 = vadd.f32 %v591_v58, %v3699_v61 }
 0x53b   :  { %v625_v10 = vsel %vm333_vm4, %v597_v59, -inf }
 0x53c   :  { %617 = vmax.xlane.f32.xlu0 %v616_v60  ;;  %v2763_v0 = vpop.f32.mrb[14].mxu0  ;;  %v622_v14 = vsel %vm333_vm4, %v592_v3, -inf }
 0x53d   :  { %v601_v1 = vpop.f32.mrb[15].mxu0  ;;  %v607_v18 = vadd.f32 %v2763_v0, %v3713_v17 }
 0x53e   :  { %v602_v12 = vadd.f32 %v601_v1, %v3706_v11 }
 0x53f   :  { %v631_v20 = vsel %vm333_vm4, %v607_v18, -inf }
 0x540   :  { %626 = vmax.xlane.f32.xlu0 %v625_v10  ;;  %v628_v19 = vsel %vm333_vm4, %v602_v12, -inf }
 0x544   :  { %623 = vmax.xlane.f32.xlu0 %v622_v14 }
 0x548   :  { %629 = vmax.xlane.f32.xlu0 %v628_v19 }
 0x54c   :  { %632 = vmax.xlane.f32.xlu0 %v631_v20 }
 0x5c1   :  { %v615_v21 = vpop.xlane.xlu0 %614 }
 0x5c2   :  { %v635_v22 = vsub.f32 %v577_v44, %v615_v21  ;;  %v612_v25 = vpop.xlane.xlu1 %611 }
 0x5c3   :  { %v634_v28 = vsub.f32 %v572_v46, %v612_v25 }
 0x5c4   :  { %v644_v29 = vmul.f32 1.442695, %v635_v22 }
 0x5c5   :  { %v642_v31 = vmul.f32 1.442695, %v634_v28  ;;  %v621_v34 = vpop.xlane.xlu0 %620 }
 0x5c6   :  { %3232 = vpow2.f32 %v644_v29  ;;  %v637_v35 = vsub.f32 %v587_v52, %v621_v34 }
 0x5c7   :  { %3234 = vpow2.f32 %v642_v31 }
 0x5c8   :  { %v648_v36 = vmul.f32 1.442695, %v637_v35 }
 0x5c9   :  { %v618_v37 = vpop.xlane.xlu0 %617 }
 0x5ca   :  { %3236 = vpow2.f32 %v648_v36  ;;  %v636_v39 = vsub.f32 %v582_v54, %v618_v37 }
 0x5cc   :  { %v646_v40 = vmul.f32 1.442695, %v636_v39 }
 0x5cd   :  { %v627_v43 = vpop.xlane.xlu0 %626 }
 0x5ce   :  { %3238 = vpow2.f32 %v646_v40  ;;  %v639_v45 = vsub.f32 %v597_v59, %v627_v43 }
 0x5d0   :  { %v3718_v48 = vpop.eup %3232  ;;  %v652_v49 = vmul.f32 1.442695, %v639_v45 }
 0x5d1   :  { %v3235_v44 = vpop.eup %3234  ;;  %v624_v51 = vpop.xlane.xlu0 %623  ;;  %v661_v46 = vsel %vm333_vm4, %v3718_v48, 0.0 }
 0x5d2   :  { %3240 = vpow2.f32 %v652_v49  ;;  %v638_v53 = vsub.f32 %v592_v3, %v624_v51  ;;  %662 = vadd.xlane.f32.xlu0 %v661_v46  ;;  %v658_v52 = vsel %vm333_vm4, %v3235_v44, 0.0 }
 0x5d3   :  { %659 = vadd.xlane.f32.xlu1 %v658_v52 }
 0x5d4   :  { %v3723_v55 = vpop.eup %3236  ;;  %v650_v54 = vmul.f32 1.442695, %v638_v53 }
 0x5d5   :  { %v630_v57 = vpop.xlane.xlu0 %629  ;;  %v667_v58 = vsel %vm333_vm4, %v3723_v55, 0.0 }
 0x5d6   :  { %3242 = vpow2.f32 %v650_v54  ;;  %v640_v59 = vsub.f32 %v602_v12, %v630_v57  ;;  %668 = vadd.xlane.f32.xlu0 %v667_v58 }
 0x5d8   :  { %v3239_v60 = vpop.eup %3238  ;;  %v654_v0 = vmul.f32 1.442695, %v640_v59 }
 0x5d9   :  { %v633_v1 = vpop.xlane.xlu0 %632  ;;  %v664_v10 = vsel %vm333_vm4, %v3239_v60, 0.0 }
 0x5da   :  { %3244 = vpow2.f32 %v654_v0  ;;  %v641_v3 = vsub.f32 %v607_v18, %v633_v1  ;;  %665 = vadd.xlane.f32.xlu1 %v664_v10 }
 0x5dc   :  { %v3241_v14 = vpop.eup %3240  ;;  %v656_v19 = vmul.f32 1.442695, %v641_v3 }
 0x5dd   :  { %v673_v20 = vsel %vm333_vm4, %v3241_v14, 0.0 }
 0x5de   :  { %3246 = vpow2.f32 %v656_v19  ;;  %674 = vadd.xlane.f32.xlu0 %v673_v20 }
 0x5e0   :  { %v3243_v21 = vpop.eup %3242 }
 0x5e1   :  { %v670_v22 = vsel %vm333_vm4, %v3243_v21, 0.0 }
 0x5e2   :  { %671 = vadd.xlane.f32.xlu1 %v670_v22 }
 0x5e4   :  { %v3245_v12 = vpop.eup %3244 }
 0x5e5   :  { %v676_v25 = vsel %vm333_vm4, %v3245_v12, 0.0 }
 0x5e6   :  { %677 = vadd.xlane.f32.xlu1 %v676_v25 }
 0x5e8   :  { %v3247_v28 = vpop.eup %3246 }
 0x5e9   :  { %v679_v29 = vsel %vm333_vm4, %v3247_v28, 0.0 }
 0x5ea   :  { %680 = vadd.xlane.f32.xlu0 %v679_v29 }
 0x5f7   :  { %3214 = vrot.lane.b32.xlu1 %v3550_v2, %s3347_s27 }
 0x65f   :  { %v663_v35 = vpop.xlane.xlu0 %662 }
 0x660   :  { %v660_v18 = vpop.xlane.xlu1 %659 }
 0x661   :  { %3248 = vrcp.f32 %v660_v18 }
 0x662   :  { %3250 = vrcp.f32 %v663_v35 }
 0x663   :  { %v669_v39 = vpop.xlane.xlu0 %668 }
 0x667   :  { %v666_v34 = vpop.xlane.xlu1 %665 }
 0x668   :  { %3252 = vrcp.f32 %v666_v34 }
 0x669   :  { %3254 = vrcp.f32 %v669_v39 }
 0x66b   :  { %v3249_v31 = vpop.eup %3248  ;;  %v675_v43 = vpop.xlane.xlu0 %674 }
 0x66c   :  { %v690_v36 = vmul.f32 %v3249_v31, %v3235_v44  ;;  %v3251_v53 = vpop.eup %3250 }
 0x66d   :  { %v691_v44 = vmul.f32 %v3251_v53, %v3718_v48 }
 0x66e   :  { %2768 = vmatprep.mubr.msk.f32.mxu1 %vm333_vm4, %v690_v36 }
 0x66f   :  { %v672_v37 = vpop.xlane.xlu1 %671 }
 0x670   :  { %3256 = vrcp.f32 %v672_v37 }
 0x671   :  { %3258 = vrcp.f32 %v675_v43 }
 0x672   :  { %v3253_v52 = vpop.eup %3252 }
 0x673   :  { %v678_v40 = vpop.xlane.xlu1 %677  ;;  %v3255_v54 = vpop.eup %3254  ;;  %v692_v57 = vmul.f32 %v3253_v52, %v3239_v60  ;;  %v922_v60 = vld [vmem:[%s4187_s10] sm:$0xff] }
 0x674   :  { %3260 = vrcp.f32 %v678_v40  ;;  %v693_v59 = vmul.f32 %v3255_v54, %v3723_v55  ;;  %v3747_v55 = vld [vmem:[%s4224_s4] sm:$0xff] }
 0x675   :  { %2796 = vmatprep.mubr.msk.f32.mxu0 %vm98_vm0, %v3747_v55 }
 0x677   :  { %v3215_v45 = vpop.permute.xlu1 %3214  ;;  %v681_v46 = vpop.xlane.xlu0 %680 }
 0x678   :  { %v3217_v49 = vunpack.i.h.bf16 %v3215_v45  ;;  %v3216_v51 = vunpack.i.l.bf16 %v3215_v45  ;;  %3262 = vrcp.f32 %v681_v46 }
 0x67a   :  { %v3036_v2 = vpack.c.bf16 %v3217_v49, %v3216_v51  ;;  %v3257_v58 = vpop.eup %3256 }
 0x67b   :  { %v3259_v0 = vpop.eup %3258  ;;  %v694_v1 = vmul.f32 %v3257_v58, %v3243_v21  ;;  %v924_v21 = vld [vmem:[%s4187_s10 + $0x10] sm:$0xff] }
 0x67c   :  { %3037 = vmatprep.subr.bf16.mxu1 %v3036_v2  ;;  %v695_v3 = vmul.f32 %v3259_v0, %v3241_v14  ;;  %v923_v14 = vld [vmem:[%s4187_s10 + $0x8] sm:$0xff] }
 0x67d   :  { %3039 = vmatpush3.bf16.msra.mxu1 %v3036_v2  ;;  %v3056_v22 = vpack.c.bf16 %v923_v14, %v922_v60 }
 0x67e   :  { %v3261_v10 = vpop.eup %3260 }
 0x67f   :  { %v696_v20 = vmul.f32 %v3261_v10, %v3245_v12  ;;  %v925_v12 = vld [vmem:[%s4187_s10 + $0x18] sm:$0xff]  ;;  %3057 = vmatprep.subr.bf16.mxu1 %v3056_v22 }
 0x680   :  { %2769 = vmatmul.mubr.msk.f32.vlgmr.msra.gmra.mrb[4].mxu1 %vm333_vm4, %v691_v44  ;;  %v3060_v25 = vpack.c.bf16 %v925_v12, %v924_v21 }
 0x681   :  { %2771 = vmatprep.mubr.msk.f32.mxu1 %vm333_vm4, %v692_v57  ;;  %3059 = vmatpush3.bf16.msra.mxu1 %v3056_v22  ;;  %v3774_v57 = vld [vmem:[%s4224_s4 + $0x8] sm:$0xff] }
 0x682   :  { %v3263_v19 = vpop.eup %3262  ;;  %3061 = vmatprep.subr.bf16.mxu1 %v3060_v25 }
 0x683   :  { %v697_v48 = vmul.f32 %v3263_v19, %v3247_v28 }
 0x684   :  { %2772 = vmatmul.mubr.msk.f32.gmra.mrb[6].mxu1 %vm333_vm4, %v693_v59 }
 0x685   :  { %2774 = vmatprep.mubr.msk.f32.mxu1 %vm333_vm4, %v694_v1  ;;  %3063 = vmatpush3.bf16.msra.mxu1 %v3060_v25  ;;  %v2453_v1 = vld [vmem:[%s4188_s11] ss:$0 sm:$0xff] }
 0x688   :  { %2775 = vmatmul.mubr.msk.f32.gmra.mrb[8].mxu1 %vm333_vm4, %v695_v3 }
 0x689   :  { %2777 = vmatprep.mubr.msk.f32.mxu1 %vm333_vm4, %v696_v20 }
 0x68c   :  { %2778 = vmatmul.mubr.msk.f32.gmra.mrb[10].mxu1 %vm333_vm4, %v697_v48 }
 0x753   :  { %v2770_v28 = vpop.f32.mrb[4].mxu1 }
 0x754   :  { %v834_v29 = vmul.f32 %v2770_v28, %v3614_v16  ;;  %v794_v18 = vpop.f32.mrb[5].mxu1 }
 0x755   :  { %v833_v31 = vmul.f32 %v794_v18, %v3609_v15 }
 0x757   :  { %v3040_v34 = vpack.c.bf16 %v834_v29, %v833_v31  ;;  %v2773_v35 = vpop.f32.mrb[6].mxu1 }
 0x758   :  { %v836_v36 = vmul.f32 %v2773_v35, %v3626_v24  ;;  %v804_v37 = vpop.f32.mrb[7].mxu1  ;;  %v1057_v35 = vld [vmem:[%s4191_s14 + $0x8] sm:$0xff] }
 0x759   :  { %v835_v39 = vmul.f32 %v804_v37, %v3621_v23  ;;  %3041 = vmatprep.subr.bf16.mxu0 %v3040_v34  ;;  %v1058_v37 = vld [vmem:[%s4191_s14 + $0x10] sm:$0xff] }
 0x75a   :  { %3043 = vmatpush3.bf16.msra.mxu0 %v3040_v34  ;;  %v1056_v34 = vld [vmem:[%s4191_s14] sm:$0xff] }
 0x75b   :  { %v3044_v40 = vpack.c.bf16 %v836_v36, %v835_v39  ;;  %v2776_v43 = vpop.f32.mrb[8].mxu1  ;;  %v3064_v36 = vpack.c.bf16 %v1057_v35, %v1056_v34  ;;  %v1059_v39 = vld [vmem:[%s4191_s14 + $0x18] sm:$0xff]  ;;  %v2454_v35 = vld [vmem:[%s4189_s12] ss:$0 sm:$0xff] }
 0x75c   :  { %v838_v45 = vmul.f32 %v2776_v43, %v3634_v30  ;;  %v814_v49 = vpop.f32.mrb[9].mxu1  ;;  %v1148_v43 = vld [vmem:[%s4193_s16] sm:$0xff] }
 0x75d   :  { %v837_v51 = vmul.f32 %v814_v49, %v3640_v32  ;;  %3045 = vmatprep.subr.bf16.mxu0 %v3044_v40  ;;  %v1150_v49 = vld [vmem:[%s4193_s16 + $0x10] sm:$0xff] }
 0x75e   :  { %3047 = vmatpush3.bf16.msra.mxu0 %v3044_v40  ;;  %v3068_v40 = vpack.c.bf16 %v1059_v39, %v1058_v37  ;;  %v2455_v37 = vld [vmem:[%s4190_s13] ss:$0 sm:$0xff] }
 0x75f   :  { %v3048_v2 = vpack.c.bf16 %v838_v45, %v837_v51  ;;  %v2779_v46 = vpop.f32.mrb[10].mxu1  ;;  %v1149_v45 = vld [vmem:[%s4193_s16 + $0x8] sm:$0xff] }
 0x760   :  { %v840_v53 = vmul.f32 %v2779_v46, %v3654_v38  ;;  %v824_v52 = vpop.f32.mrb[11].mxu1  ;;  %v3072_v51 = vpack.c.bf16 %v1149_v45, %v1148_v43 }
 0x761   :  { %v839_v44 = vmul.f32 %v824_v52, %v3645_v33  ;;  %3049 = vmatprep.subr.bf16.mxu0 %v3048_v2  ;;  %v1153_v52 = vld [vmem:[%s4193_s16 + $0x28] sm:$0xff] }
 0x762   :  { %3051 = vmatpush3.bf16.msra.mxu0 %v3048_v2  ;;  %v1151_v2 = vld [vmem:[%s4193_s16 + $0x18] sm:$0xff]  ;;  %3073 = vmatprep.subr.bf16.mxu1 %v3072_v51 }
 0x763   :  { %v3052_v54 = vpack.c.bf16 %v840_v53, %v839_v44  ;;  %v3076_v46 = vpack.c.bf16 %v1151_v2, %v1150_v49  ;;  %v1152_v53 = vld [vmem:[%s4193_s16 + $0x20] sm:$0xff]  ;;  %v1162_v2 = vld [vmem:[%s4193_s16 + $0x70] sm:$0xff] }
 0x764   :  { %v3080_v44 = vpack.c.bf16 %v1153_v52, %v1152_v53 }
 0x765   :  { %3053 = vmatprep.subr.bf16.mxu0 %v3052_v54 }
 0x766   :  { %3055 = vmatpush3.bf16.msra.mxu0 %v3052_v54  ;;  %v1154_v54 = vld [vmem:[%s4193_s16 + $0x30] sm:$0xff] }
 0x767   :  { %3065 = vmatprep.subr.bf16.mxu0 %v3064_v36 }
 0x769   :  { %2797 = vmatmul.mubr.msk.f32.vlgmr.msra.gmra.mrb[16].mxu0 %vm98_vm0, %v3774_v57 }
 0x76a   :  { %3067 = vmatpush3.bf16.msra.mxu0 %v3064_v36 }
 0x76b   :  { %3069 = vmatprep.subr.bf16.mxu0 %v3068_v40 }
 0x76e   :  { %3071 = vmatpush3.bf16.msra.mxu0 %v3068_v40 }
 0x83c   :  { %v2798_v58 = vpop.f32.mrb[16].mxu0 }
 0x83d   :  { %v913_v59 = vpop.f32.mrb[17].mxu0 }
 0x83e   :  { %2807 = vmatprep.mubr.msk.f32.mxu1 %vm208_vm3, %v913_v59 }
 0x83f   :  { %2808 = vmatmul.mubr.msk.f32.vlgmr.msra.gmra.mrb[12].mxu1 %vm208_vm3, %v2798_v58  ;;  %v1155_v58 = vld [vmem:[%s4193_s16 + $0x38] sm:$0xff] }
 0x840   :  { %3075 = vmatpush3.bf16.msra.mxu1 %v3072_v51  ;;  %v3084_v59 = vpack.c.bf16 %v1155_v58, %v1154_v54 }
 0x841   :  { %3077 = vmatprep.subr.bf16.mxu1 %v3076_v46 }
 0x844   :  { %3079 = vmatpush3.bf16.msra.mxu1 %v3076_v46 }
 0x845   :  { %3081 = vmatprep.subr.bf16.mxu1 %v3080_v44 }
 0x848   :  { %3083 = vmatpush3.bf16.msra.mxu1 %v3080_v44 }
 0x849   :  { %3085 = vmatprep.subr.bf16.mxu1 %v3084_v59 }
 0x84c   :  { %3087 = vmatpush3.bf16.msra.mxu1 %v3084_v59 }
 0x912   :  { %v2809_v0 = vpop.f32.mrb[12].mxu1 }
 0x913   :  { %v998_v10 = vpop.f32.mrb[13].mxu1  ;;  %v1008_v3 = vadd.f32 %v2809_v0, %v3506_v27  ;;  %v1156_v0 = vld [vmem:[%s4193_s16 + $0x40] sm:$0xff] }
 0x914   :  { %v1007_v19 = vadd.f32 %v998_v10, %v3504_v26 }
 0x915   :  { %v3787_v48 = vadd.f32 %v2453_v1, %v1008_v3  ;;  %v1158_v3 = vld [vmem:[%s4193_s16 + $0x50] sm:$0xff] }
 0x916   :  { %v3785_v20 = vadd.f32 %v2453_v1, %v1007_v19  ;;  %v1157_v1 = vld [vmem:[%s4193_s16 + $0x48] sm:$0xff]  ;;  %v1159_v19 = vld [vmem:[%s4193_s16 + $0x58] sm:$0xff] }
 0x917   :  { %v1021_v14 = vsel %vm208_vm3, %v3787_v48, 0.0  ;;  %v3088_v10 = vpack.c.bf16 %v1157_v1, %v1156_v0  ;;  %v2459_v1 = vld [vmem:[%s4225_s2] ss:$0 sm:$0xff] }
 0x918   :  { %v1018_v60 = vsel %vm208_vm3, %v3785_v20, 0.0 }
 0x919   :  { %1019 = vadd.xlane.f32.xlu0 %v1018_v60  ;;  %3089 = vmatprep.subr.bf16.mxu1 %v3088_v10  ;;  %v3092_v60 = vpack.c.bf16 %v1159_v19, %v1158_v3 }
 0x91a   :  { %3091 = vmatpush3.bf16.msra.mxu1 %v3088_v10 }
 0x91b   :  { %3093 = vmatprep.subr.bf16.mxu1 %v3092_v60 }
 0x91d   :  { %1022 = vadd.xlane.f32.xlu0 %v1021_v14  ;;  %v1160_v14 = vld [vmem:[%s4193_s16 + $0x60] sm:$0xff] }
 0x91e   :  { %3095 = vmatpush3.bf16.msra.mxu1 %v3092_v60 }
 0x9a6   :  { %v1020_v21 = vpop.xlane.xlu0 %1019 }
 0x9a7   :  { %v1024_v22 = vmul.f32 0.03125, %v1020_v21  ;;  %v1161_v21 = vld [vmem:[%s4193_s16 + $0x68] sm:$0xff] }
 0x9a9   :  { %v3794_v12 = vsub.f32 %v3785_v20, %v1024_v22  ;;  %v3096_v22 = vpack.c.bf16 %v1161_v21, %v1160_v14 }
 0x9aa   :  { %v1023_v27 = vpop.xlane.xlu0 %1022 }
 0x9ab   :  { %v1025_v25 = vmul.f32 0.03125, %v1023_v27  ;;  %v1028_v26 = vmul.f32 %v3794_v12, %v3794_v12  ;;  %3097 = vmatprep.subr.bf16.mxu1 %v3096_v22 }
 0x9ac   :  { %3099 = vmatpush3.bf16.msra.mxu1 %v3096_v22 }
 0x9ad   :  { %v3799_v28 = vsub.f32 %v3787_v48, %v1025_v25  ;;  %v1030_v29 = vsel %vm208_vm3, %v1028_v26, 0.0 }
 0x9ae   :  { %1031 = vadd.xlane.f32.xlu0 %v1030_v29 }
 0x9af   :  { %v1029_v18 = vmul.f32 %v3799_v28, %v3799_v28 }
 0x9b1   :  { %v1033_v31 = vsel %vm208_vm3, %v1029_v18, 0.0 }
 0x9b2   :  { %1034 = vadd.xlane.f32.xlu0 %v1033_v31 }
 0xa3b   :  { %v1032_v27 = vpop.xlane.xlu0 %1031 }
 0xa3c   :  { %v1036_v25 = vmul.f32 0.03125, %v1032_v27 }
 0xa3e   :  { %v1038_v26 = vadd.f32 1e-05, %v1036_v25 }
 0xa3f   :  { %v1035_v29 = vpop.xlane.xlu0 %1034 }
 0xa40   :  { %3264 = vrsqrt.f32 %v1038_v26  ;;  %v1037_v18 = vmul.f32 0.03125, %v1035_v29 }
 0xa42   :  { %v1039_v31 = vadd.f32 1e-05, %v1037_v18 }
 0xa44   :  { %3266 = vrsqrt.f32 %v1039_v31 }
 0xa4a   :  { %v3265_v34 = vpop.eup %3264 }
 0xa4b   :  { %v1042_v36 = vmul.f32 %v3265_v34, %v3794_v12  ;;  %v1163_v12 = vld [vmem:[%s4193_s16 + $0x78] sm:$0xff] }
 0xa4c   :  { %v3100_v46 = vpack.c.bf16 %v1163_v12, %v1162_v2 }
 0xa4d   :  { %v1048_v39 = vmul.f32 %v2454_v35, %v1042_v36  ;;  %v2462_v36 = vld [vmem:[%s4186_s9 + $0x20] sm:$0xff] }
 0xa4e   :  { %v3267_v40 = vpop.eup %3266  ;;  %3101 = vmatprep.subr.bf16.mxu1 %v3100_v46 }
 0xa4f   :  { %v1043_v43 = vmul.f32 %v3267_v40, %v3799_v28  ;;  %v1054_v45 = vadd.f32 %v2455_v37, %v1048_v39  ;;  %3103 = vmatpush3.bf16.msra.mxu1 %v3100_v46  ;;  %v2456_v28 = vld [vmem:[%s4192_s15] ss:$0 sm:$0xff]  ;;  %v2464_v40 = vld [vmem:[%s4186_s9 + $0x30] sm:$0xff] }
 0xa51   :  { %v1049_v49 = vmul.f32 %v2454_v35, %v1043_v43  ;;  %2818 = vmatprep.mubr.msk.f32.mxu0 %vm208_vm3, %v1054_v45  ;;  %v2465_v43 = vld [vmem:[%s4186_s9 + $0x38] sm:$0xff] }
 0xa52   :  { %v3108_v45 = vpack.c.bf16 %v2465_v43, %v2464_v40 }
 0xa53   :  { %v1055_v51 = vadd.f32 %v2455_v37, %v1049_v49  ;;  %v2463_v37 = vld [vmem:[%s4186_s9 + $0x28] sm:$0xff] }
 0xa54   :  { %v3104_v39 = vpack.c.bf16 %v2463_v37, %v2462_v36 }
 0xa55   :  { %2819 = vmatmul.mubr.msk.f32.vlgmr.msra.gmra.mrb[18].mxu0 %vm208_vm3, %v1055_v51 }
 0xa56   :  { %3105 = vmatprep.subr.bf16.mxu0 %v3104_v39 }
 0xa57   :  { %3107 = vmatpush3.bf16.msra.mxu0 %v3104_v39 }
 0xa58   :  { %3109 = vmatprep.subr.bf16.mxu0 %v3108_v45 }
 0xa5b   :  { %3111 = vmatpush3.bf16.msra.mxu0 %v3108_v45 }
 0xb28   :  { %v2820_v53 = vpop.f32.mrb[18].mxu0 }
 0xb29   :  { %v1143_v52 = vadd.f32 %v2820_v53, %v2456_v28  ;;  %v1137_v44 = vpop.f32.mrb[19].mxu0 }
 0xb2a   :  { %v1138_v54 = vadd.f32 %v2456_v28, %v1137_v44 }
 0xb2b   :  { %v1147_v59 = vmax.f32 %v1143_v52, 0.0  ;;  %v2460_v52 = vld [vmem:[%s4184_s7 + $0x1] ss:$0 sm:$0xff] }
 0xb2c   :  { %v1146_v58 = vmax.f32 %v1138_v54, 0.0  ;;  %v2461_v54 = vld [vmem:[%s4185_s8 + $0x1] ss:$0 sm:$0xff] }
 0xb2e   :  { %2853 = vmatprep.mubr.f32.mxu1 %v1146_v58 }
 0xb2f   :  { %2854 = vmatmul.mubr.f32.vlgmr.msra.gmra.mrb[14].mxu1 %v1147_v59 }
 0xc02   :  { %v2855_v0 = vpop.f32.mrb[14].mxu1 }
 0xc03   :  { %v1240_v10 = vadd.f32 %v2855_v0, %v3787_v48  ;;  %v1230_v3 = vpop.f32.mrb[15].mxu1 }
 0xc04   :  { %v1239_v19 = vadd.f32 %v1230_v3, %v3785_v20 }
 0xc05   :  { %v3883_v60 = vadd.f32 %v2459_v1, %v1240_v10 }
 0xc06   :  { %v3885_v14 = vadd.f32 %v2459_v1, %v1239_v19 }
 0xc07   :  { %v1253_v21 = vsel %vm208_vm3, %v3883_v60, 0.0 }
 0xc08   :  { %1254 = vadd.xlane.f32.xlu0 %v1253_v21  ;;  %v1250_v22 = vsel %vm208_vm3, %v3885_v14, 0.0 }
 0xc09   :  { %1251 = vadd.xlane.f32.xlu1 %v1250_v22 }
 0xc95   :  { %v1255_v27 = vpop.xlane.xlu0 %1254 }
 0xc96   :  { %v1257_v25 = vmul.f32 0.03125, %v1255_v27  ;;  %v1252_v26 = vpop.xlane.xlu1 %1251 }
 0xc97   :  { %v1256_v29 = vmul.f32 0.03125, %v1252_v26 }
 0xc98   :  { %v1259_v48 = vsub.f32 %v3883_v60, %v1257_v25 }
 0xc99   :  { %v1258_v20 = vsub.f32 %v3885_v14, %v1256_v29 }
 0xc9a   :  { %v1261_v34 = vmul.f32 %v1259_v48, %v1259_v48 }
 0xc9b   :  { %v1260_v18 = vmul.f32 %v1258_v20, %v1258_v20 }
 0xc9c   :  { %v1265_v35 = vsel %vm208_vm3, %v1261_v34, 0.0 }
 0xc9d   :  { %v1262_v31 = vsel %vm208_vm3, %v1260_v18, 0.0 }
 0xc9e   :  { %1263 = vadd.xlane.f32.xlu0 %v1262_v31 }
 0xca2   :  { %1266 = vadd.xlane.f32.xlu0 %v1265_v35 }
 0xd2b   :  { %v1264_v49 = vpop.xlane.xlu0 %1263 }
 0xd2c   :  { %v1268_v51 = vmul.f32 0.03125, %v1264_v49 }
 0xd2e   :  { %v1270_v2 = vadd.f32 1e-05, %v1268_v51 }
 0xd2f   :  { %v1267_v12 = vpop.xlane.xlu0 %1266 }
 0xd30   :  { %3268 = vrsqrt.f32 %v1270_v2  ;;  %v1269_v46 = vmul.f32 0.03125, %v1267_v12 }
 0xd32   :  { %v1271_v28 = vadd.f32 1e-05, %v1269_v46 }
 0xd34   :  { %3270 = vrsqrt.f32 %v1271_v28 }
 0xd3a   :  { %v3269_v53 = vpop.eup %3268 }
 0xd3b   :  { %v1274_v44 = vmul.f32 %v3269_v53, %v1258_v20 }
 0xd3d   :  { %v1280_v58 = vmul.f32 %v2460_v52, %v1274_v44 }
 0xd3e   :  { %v3271_v59 = vpop.eup %3270 }
 0xd3f   :  { %v1275_v0 = vmul.f32 %v3271_v59, %v1259_v48  ;;  %v1286_v1 = vadd.f32 %v2461_v54, %v1280_v58 }
 0xd41   :  { %v1281_v10 = vmul.f32 %v2460_v52, %v1275_v0  ;;  %2864 = vmatprep.mubr.msk.f32.mxu0 %vm208_vm3, %v1286_v1 }
 0xd43   :  { %v1287_v3 = vadd.f32 %v2461_v54, %v1281_v10 }
 0xd45   :  { %2865 = vmatmul.mubr.msk.f32.vlgmr.msra.gmra.mrb[20].mxu0 %vm208_vm3, %v1287_v3 }
 0xd46   :  { %2871 = vmatprep.mubr.msk.f32.mxu0 %vm333_vm4, %v3539_v62 }
 0xe18   :  { %v2866_v19 = vpop.f32.mrb[20].mxu0 }
 0xe19   :  { %v1365_v21 = vpop.f32.mrb[21].mxu0 }
 0xe1a   :  { %v3917_v22 = vpack.i.bf16 %v2866_v19, %v1365_v21  ;;  %v3112_v27 = vpack.c.bf16 %v2866_v19, %v1365_v21 }
 0xe1c   :  { %3219 = vrot.lane.b32.xlu0 %v3917_v22, %s3346_s25  ;;  %3113 = vmatprep.subr.bf16.mxu0 %v3112_v27 }
 0xe1d   :  { %3115 = vmatpush3.bf16.msra.mxu0 %v3112_v27 }
 0xe20   :  { %2872 = vmatmul.mubr.msk.f32.vlgmr.msra.gmra.mrb[22].mxu0 %vm333_vm4, %v3557_v4 }
 0xe21   :  { %2874 = vmatprep.mubr.msk.f32.mxu0 %vm333_vm4, %v3562_v5 }
 0xe24   :  { %2875 = vmatmul.mubr.msk.f32.gmra.mrb[24].mxu0 %vm333_vm4, %v3576_v7 }
 0xe25   :  { %2877 = vmatprep.mubr.msk.f32.mxu0 %vm333_vm4, %v3583_v8 }
 0xe28   :  { %2878 = vmatmul.mubr.msk.f32.gmra.mrb[26].mxu0 %vm333_vm4, %v3592_v9 }
 0xe29   :  { %2880 = vmatprep.mubr.msk.f32.mxu0 %vm333_vm4, %v3546_v63 }
 0xe2c   :  { %2881 = vmatmul.mubr.msk.f32.gmra.mrb[28].mxu0 %vm333_vm4, %v3567_v6 }
 0xe8e   :  { %v3220_v62 = vpop.permute.xlu0 %3219 }
 0xe8f   :  { %v3222_v4 = vunpack.i.h.bf16 %v3220_v62  ;;  %v3221_v25 = vunpack.i.l.bf16 %v3220_v62 }
 0xe91   :  { %v3116_v26 = vpack.c.bf16 %v3222_v4, %v3221_v25 }
 0xe93   :  { %3118 = vmatprep.subr.msk.bf16.mxu0 %vm3598_vm5, %v3116_v26 }
 0xe94   :  { %3121 = vmatpush3.bf16.xpose.msk.msra.mxu0 %vm3598_vm5, %v3116_v26 }
 0xef3   :  { %v2873_v5 = vpop.f32.mrb[22].mxu0 }
 0xef4   :  { %v1440_v7 = vpop.f32.mrb[23].mxu0  ;;  %v1480_v9 = vmul.f32 %v2873_v5, %v3614_v16 }
 0xef5   :  { %v1479_v8 = vmul.f32 %v1440_v7, %v3609_v15 }
 0xef7   :  { %v2876_v63 = vpop.f32.mrb[24].mxu0  ;;  %2887 = vmatprep.mubr.msk.f32.mxu0 %vm208_vm3, %v1479_v8 }
 0xef8   :  { %v1450_v6 = vpop.f32.mrb[25].mxu0  ;;  %2888 = vmatmul.mubr.msk.f32.vlgmr.msra.gmra.mrb[30].mxu0 %vm208_vm3, %v1480_v9  ;;  %v1482_v48 = vmul.f32 %v2876_v63, %v3626_v24 }
 0xef9   :  { %v1481_v29 = vmul.f32 %v1450_v6, %v3621_v23 }
 0xefb   :  { %2890 = vmatprep.mubr.msk.f32.mxu0 %vm208_vm3, %v1481_v29  ;;  %v2879_v13 = vpop.f32.mrb[26].mxu0 }
 0xefc   :  { %v1484_v20 = vmul.f32 %v2879_v13, %v3634_v30  ;;  %2891 = vmatmul.mubr.msk.f32.gmra.mrb[32].mxu0 %vm208_vm3, %v1482_v48  ;;  %v1460_v15 = vpop.f32.mrb[27].mxu0 }
 0xefd   :  { %v1483_v16 = vmul.f32 %v1460_v15, %v3640_v32 }
 0xeff   :  { %2893 = vmatprep.mubr.msk.f32.mxu0 %vm208_vm3, %v1483_v16  ;;  %v2882_v18 = vpop.f32.mrb[28].mxu0 }
 0xf00   :  { %2894 = vmatmul.mubr.msk.f32.gmra.mrb[34].mxu0 %vm208_vm3, %v1484_v20  ;;  %v1486_v31 = vmul.f32 %v2882_v18, %v3654_v38  ;;  %v1470_v23 = vpop.f32.mrb[29].mxu0 }
 0xf01   :  { %v1485_v24 = vmul.f32 %v1470_v23, %v3645_v33 }
 0xf03   :  { %2896 = vmatprep.mubr.msk.f32.mxu0 %vm208_vm3, %v1485_v24 }
 0xf04   :  { %2897 = vmatmul.mubr.msk.f32.gmra.mrb[36].mxu0 %vm208_vm3, %v1486_v31 }
 0xf05   :  { %2931 = vmatprep.mubr.msk.f32.mxu0 %vm98_vm0, %v3747_v55 }
 0xfcb   :  { %v2889_v30 = vpop.f32.mrb[30].mxu0 }
 0xfcc   :  { %v1593_v32 = vadd.f32 %v2889_v30, %v3665_v41  ;;  %v1587_v34 = vpop.f32.mrb[31].mxu0 }
 0xfcd   :  { %v1588_v35 = vadd.f32 %v1587_v34, %v3670_v42 }
 0xfce   :  { %v1629_v36 = vsel %vm333_vm4, %v1593_v32, -inf }
 0xfcf   :  { %1630 = vmax.xlane.f32.xlu1 %v1629_v36  ;;  %v2892_v38 = vpop.f32.mrb[32].mxu0  ;;  %v1626_v37 = vsel %vm333_vm4, %v1588_v35, -inf }
 0xfd0   :  { %v1603_v33 = vadd.f32 %v2892_v38, %v3677_v47  ;;  %v1597_v39 = vpop.f32.mrb[33].mxu0  ;;  %1627 = vmax.xlane.f32.xlu0 %v1626_v37 }
 0xfd1   :  { %v1598_v40 = vadd.f32 %v1597_v39, %v3683_v50 }
 0xfd2   :  { %v1635_v55 = vsel %vm333_vm4, %v1603_v33, -inf }
 0xfd3   :  { %1636 = vmax.xlane.f32.xlu1 %v1635_v55  ;;  %v2895_v43 = vpop.f32.mrb[34].mxu0  ;;  %v1632_v42 = vsel %vm333_vm4, %v1598_v40, -inf }
 0xfd4   :  { %v1607_v41 = vpop.f32.mrb[35].mxu0  ;;  %v1613_v45 = vadd.f32 %v2895_v43, %v3692_v56 }
 0xfd5   :  { %v1608_v2 = vadd.f32 %v1607_v41, %v3699_v61 }
 0xfd6   :  { %v1641_v47 = vsel %vm333_vm4, %v1613_v45, -inf }
 0xfd7   :  { %1633 = vmax.xlane.f32.xlu1 %v1632_v42  ;;  %v2898_v49 = vpop.f32.mrb[36].mxu0  ;;  %v1638_v50 = vsel %vm333_vm4, %v1608_v2, -inf }
 0xfd8   :  { %v1617_v51 = vpop.f32.mrb[37].mxu0  ;;  %v1623_v46 = vadd.f32 %v2898_v49, %v3713_v17 }
 0xfd9   :  { %v1618_v12 = vadd.f32 %v1617_v51, %v3706_v11 }
 0xfda   :  { %v1647_v56 = vsel %vm333_vm4, %v1623_v46, -inf }
 0xfdb   :  { %1642 = vmax.xlane.f32.xlu1 %v1641_v47  ;;  %v1644_v28 = vsel %vm333_vm4, %v1618_v12, -inf }
 0xfdf   :  { %1639 = vmax.xlane.f32.xlu1 %v1638_v50 }
 0xfe3   :  { %1645 = vmax.xlane.f32.xlu1 %v1644_v28 }
 0xfe7   :  { %1648 = vmax.xlane.f32.xlu1 %v1647_v56 }
0x105c   :  { %v1631_v53 = vpop.xlane.xlu1 %1630 }
0x105d   :  { %v1651_v52 = vsub.f32 %v1593_v32, %v1631_v53  ;;  %v1628_v44 = vpop.xlane.xlu0 %1627 }
0x105e   :  { %v1650_v61 = vsub.f32 %v1588_v35, %v1628_v44 }
0x105f   :  { %v1660_v54 = vmul.f32 1.442695, %v1651_v52 }
0x1060   :  { %v1658_v58 = vmul.f32 1.442695, %v1650_v61  ;;  %v1637_v59 = vpop.xlane.xlu1 %1636 }
0x1061   :  { %3272 = vpow2.f32 %v1660_v54  ;;  %v1653_v11 = vsub.f32 %v1603_v33, %v1637_v59 }
0x1062   :  { %3274 = vpow2.f32 %v1658_v58 }
0x1063   :  { %v1664_v0 = vmul.f32 1.442695, %v1653_v11  ;;  %v2496_v11 = vld [vmem:[%s4187_s10 + $0x20] sm:$0xff] }
0x1064   :  { %v1634_v1 = vpop.xlane.xlu1 %1633 }
0x1065   :  { %3276 = vpow2.f32 %v1664_v0  ;;  %v1652_v17 = vsub.f32 %v1598_v40, %v1634_v1  ;;  %v2497_v0 = vld [vmem:[%s4187_s10 + $0x28] sm:$0xff]  ;;  %v2498_v1 = vld [vmem:[%s4187_s10 + $0x30] sm:$0xff] }
0x1067   :  { %v1662_v10 = vmul.f32 1.442695, %v1652_v17  ;;  %v3142_v17 = vpack.c.bf16 %v2497_v0, %v2496_v11  ;;  %v2515_v0 = vld [vmem:[%s4193_s16 + $0x98] sm:$0xff] }
0x1068   :  { %v1643_v3 = vpop.xlane.xlu1 %1642 }
0x1069   :  { %3278 = vpow2.f32 %v1662_v10  ;;  %v1655_v19 = vsub.f32 %v1613_v45, %v1643_v3  ;;  %v2499_v10 = vld [vmem:[%s4187_s10 + $0x38] sm:$0xff] }
0x106a   :  { %v3146_v3 = vpack.c.bf16 %v2499_v10, %v2498_v1  ;;  %v2517_v10 = vld [vmem:[%s4193_s16 + $0xa8] sm:$0xff] }
0x106b   :  { %v3973_v21 = vpop.eup %3272  ;;  %v1668_v27 = vmul.f32 1.442695, %v1655_v19 }
0x106c   :  { %v3275_v62 = vpop.eup %3274  ;;  %v1640_v4 = vpop.xlane.xlu1 %1639  ;;  %v1677_v25 = vsel %vm333_vm4, %v3973_v21, 0.0 }
0x106d   :  { %3280 = vpow2.f32 %v1668_v27  ;;  %v1654_v26 = vsub.f32 %v1608_v2, %v1640_v4  ;;  %1678 = vadd.xlane.f32.xlu0 %v1677_v25  ;;  %v1674_v5 = vsel %vm333_vm4, %v3275_v62, 0.0  ;;  %v3313_v4 = vld [vmem:[%s4222_s6] sm:$0xff] }
0x106e   :  { %1675 = vadd.xlane.f32.xlu1 %v1674_v5 }
0x106f   :  { %v3277_v7 = vpop.eup %3276  ;;  %v1666_v8 = vmul.f32 1.442695, %v1654_v26 }
0x1070   :  { %v1646_v9 = vpop.xlane.xlu1 %1645  ;;  %v1683_v63 = vsel %vm333_vm4, %v3277_v7, 0.0 }
0x1071   :  { %3282 = vpow2.f32 %v1666_v8  ;;  %v1656_v6 = vsub.f32 %v1618_v12, %v1646_v9  ;;  %1684 = vadd.xlane.f32.xlu0 %v1683_v63  ;;  %v3315_v63 = vld [vmem:[%s4222_s6 + $0x10] sm:$0xff] }
0x1073   :  { %v3279_v29 = vpop.eup %3278  ;;  %v1670_v48 = vmul.f32 1.442695, %v1656_v6 }
0x1074   :  { %v1649_v13 = vpop.xlane.xlu1 %1648  ;;  %v1680_v20 = vsel %vm333_vm4, %v3279_v29, 0.0 }
0x1075   :  { %3284 = vpow2.f32 %v1670_v48  ;;  %v1657_v15 = vsub.f32 %v1623_v46, %v1649_v13  ;;  %1681 = vadd.xlane.f32.xlu1 %v1680_v20  ;;  %v3316_v13 = vld [vmem:[%s4222_s6 + $0x28] sm:$0xff] }
0x1077   :  { %v3281_v16 = vpop.eup %3280  ;;  %v1672_v18 = vmul.f32 1.442695, %v1657_v15 }
0x1078   :  { %v1689_v31 = vsel %vm333_vm4, %v3281_v16, 0.0 }
0x1079   :  { %3286 = vpow2.f32 %v1672_v18  ;;  %1690 = vadd.xlane.f32.xlu0 %v1689_v31 }
0x107b   :  { %v3283_v23 = vpop.eup %3282 }
0x107c   :  { %v1686_v24 = vsel %vm333_vm4, %v3283_v23, 0.0 }
0x107d   :  { %1687 = vadd.xlane.f32.xlu1 %v1686_v24  ;;  %v3318_v24 = vld [vmem:[%s4222_s6 + $0x38] sm:$0xff] }
0x107f   :  { %v3285_v30 = vpop.eup %3284 }
0x1080   :  { %v1692_v32 = vsel %vm333_vm4, %v3285_v30, 0.0 }
0x1081   :  { %1693 = vadd.xlane.f32.xlu1 %v1692_v32 }
0x1083   :  { %v3287_v34 = vpop.eup %3286 }
0x1084   :  { %v1695_v35 = vsel %vm333_vm4, %v3287_v34, 0.0 }
0x1085   :  { %1696 = vadd.xlane.f32.xlu0 %v1695_v35 }
0x1092   :  { %3224 = vrot.lane.b32.xlu1 %v3917_v22, %s3347_s27 }
0x10fa   :  { %v1679_v33 = vpop.xlane.xlu0 %1678 }
0x10fb   :  { %v1676_v36 = vpop.xlane.xlu1 %1675 }
0x10fc   :  { %3288 = vrcp.f32 %v1676_v36 }
0x10fd   :  { %3290 = vrcp.f32 %v1679_v33 }
0x10fe   :  { %v1685_v55 = vpop.xlane.xlu0 %1684 }
0x1102   :  { %v1682_v37 = vpop.xlane.xlu1 %1681 }
0x1103   :  { %3292 = vrcp.f32 %v1682_v37 }
0x1104   :  { %3294 = vrcp.f32 %v1685_v55 }
0x1106   :  { %v3289_v38 = vpop.eup %3288  ;;  %v1691_v41 = vpop.xlane.xlu0 %1690 }
0x1107   :  { %v1706_v39 = vmul.f32 %v3289_v38, %v3275_v62  ;;  %v3291_v2 = vpop.eup %3290 }
0x1108   :  { %v1707_v12 = vmul.f32 %v3291_v2, %v3973_v21  ;;  %v3312_v21 = vld [vmem:[%s4222_s6 + $0x8] sm:$0xff] }
0x1109   :  { %2903 = vmatprep.mubr.msk.f32.mxu1 %vm333_vm4, %v1706_v39  ;;  %v2502_v39 = vld [vmem:[%s4188_s11 + $0x1] ss:$0 sm:$0xff] }
0x110a   :  { %v1688_v40 = vpop.xlane.xlu1 %1687 }
0x110b   :  { %3296 = vrcp.f32 %v1688_v40 }
0x110c   :  { %3298 = vrcp.f32 %v1691_v41 }
0x110d   :  { %v3293_v47 = vpop.eup %3292 }
0x110e   :  { %v1694_v43 = vpop.xlane.xlu1 %1693  ;;  %v3295_v50 = vpop.eup %3294  ;;  %v1708_v46 = vmul.f32 %v3293_v47, %v3279_v29 }
0x110f   :  { %3300 = vrcp.f32 %v1694_v43  ;;  %v1709_v56 = vmul.f32 %v3295_v50, %v3277_v7  ;;  %v3314_v7 = vld [vmem:[%s4222_s6 + $0x18] sm:$0xff] }
0x1112   :  { %v3225_v45 = vpop.permute.xlu1 %3224  ;;  %v1697_v22 = vpop.xlane.xlu0 %1696 }
0x1113   :  { %v3227_v42 = vunpack.i.h.bf16 %v3225_v45  ;;  %v3226_v49 = vunpack.i.l.bf16 %v3225_v45  ;;  %3302 = vrcp.f32 %v1697_v22 }
0x1115   :  { %v3122_v51 = vpack.c.bf16 %v3227_v42, %v3226_v49  ;;  %v3297_v28 = vpop.eup %3296 }
0x1116   :  { %v3299_v53 = vpop.eup %3298  ;;  %v1710_v52 = vmul.f32 %v3297_v28, %v3283_v23  ;;  %v2505_v28 = vld [vmem:[%s4191_s14 + $0x20] sm:$0xff] }
0x1117   :  { %3123 = vmatprep.subr.bf16.mxu1 %v3122_v51  ;;  %v1711_v61 = vmul.f32 %v3299_v53, %v3281_v16  ;;  %v3317_v16 = vld [vmem:[%s4222_s6 + $0x20] sm:$0xff] }
0x1118   :  { %3125 = vmatpush3.bf16.msra.mxu1 %v3122_v51 }
0x1119   :  { %v3301_v44 = vpop.eup %3300  ;;  %3143 = vmatprep.subr.bf16.mxu1 %v3142_v17 }
0x111a   :  { %v1712_v58 = vmul.f32 %v3301_v44, %v3285_v30  ;;  %v2508_v44 = vld [vmem:[%s4191_s14 + $0x38] sm:$0xff] }
0x111b   :  { %2904 = vmatmul.mubr.msk.f32.vlgmr.msra.gmra.mrb[16].mxu1 %vm333_vm4, %v1707_v12 }
0x111c   :  { %2906 = vmatprep.mubr.msk.f32.mxu1 %vm333_vm4, %v1708_v46  ;;  %3145 = vmatpush3.bf16.msra.mxu1 %v3142_v17  ;;  %v2516_v17 = vld [vmem:[%s4193_s16 + $0xa0] sm:$0xff] }
0x111d   :  { %v3303_v54 = vpop.eup %3302  ;;  %3147 = vmatprep.subr.bf16.mxu1 %v3146_v3 }
0x111e   :  { %v1713_v59 = vmul.f32 %v3303_v54, %v3287_v34  ;;  %v3319_v34 = vld [vmem:[%s4222_s6 + $0x30] sm:$0xff]  ;;  %v2512_v54 = vld [vmem:[%s4193_s16 + $0x80] sm:$0xff] }
0x111f   :  { %2907 = vmatmul.mubr.msk.f32.gmra.mrb[18].mxu1 %vm333_vm4, %v1709_v56  ;;  %v2506_v56 = vld [vmem:[%s4191_s14 + $0x28] sm:$0xff] }
0x1120   :  { %2909 = vmatprep.mubr.msk.f32.mxu1 %vm333_vm4, %v1710_v52  ;;  %3149 = vmatpush3.bf16.msra.mxu1 %v3146_v3  ;;  %v3150_v53 = vpack.c.bf16 %v2506_v56, %v2505_v28  ;;  %v2507_v52 = vld [vmem:[%s4191_s14 + $0x30] sm:$0xff]  ;;  %v3166_v3 = vpack.c.bf16 %v2517_v10, %v2516_v17  ;;  %v2308_v17 = vld [vmem:[%s4197_s20 + $0x18] sm:$0xff] }
0x1123   :  { %2910 = vmatmul.mubr.msk.f32.gmra.mrb[20].mxu1 %vm333_vm4, %v1711_v61  ;;  %v3154_v61 = vpack.c.bf16 %v2508_v44, %v2507_v52 }
0x1124   :  { %2912 = vmatprep.mubr.msk.f32.mxu1 %vm333_vm4, %v1712_v58  ;;  %v2513_v58 = vld [vmem:[%s4193_s16 + $0x88] sm:$0xff] }
0x1125   :  { %v3158_v11 = vpack.c.bf16 %v2513_v58, %v2512_v54 }
0x1127   :  { %2913 = vmatmul.mubr.msk.f32.gmra.mrb[22].mxu1 %vm333_vm4, %v1713_v59  ;;  %v2514_v59 = vld [vmem:[%s4193_s16 + $0x90] sm:$0xff]  ;;  %3159 = vmatprep.subr.bf16.mxu1 %v3158_v11 }
0x1128   :  { %v3162_v1 = vpack.c.bf16 %v2515_v0, %v2514_v59  ;;  %v2305_v59 = vld [vmem:[%s4197_s20] sm:$0xff] }
0x11ee   :  { %v2905_v19 = vpop.f32.mrb[16].mxu1 }
0x11ef   :  { %v1850_v27 = vmul.f32 %v3312_v21, %v2905_v19  ;;  %v1810_v62 = vpop.f32.mrb[17].mxu1  ;;  %v2518_v19 = vld [vmem:[%s4193_s16 + $0xb0] sm:$0xff]  ;;  %v2519_v21 = vld [vmem:[%s4193_s16 + $0xb8] sm:$0xff] }
0x11f0   :  { %v1849_v25 = vmul.f32 %v3313_v4, %v1810_v62  ;;  %v2520_v62 = vld [vmem:[%s4193_s16 + $0xc0] sm:$0xff]  ;;  %v2521_v4 = vld [vmem:[%s4193_s16 + $0xc8] sm:$0xff] }
0x11f2   :  { %v3126_v26 = vpack.c.bf16 %v1850_v27, %v1849_v25  ;;  %v2908_v5 = vpop.f32.mrb[18].mxu1  ;;  %v3170_v27 = vpack.c.bf16 %v2519_v21, %v2518_v19  ;;  %v3174_v25 = vpack.c.bf16 %v2521_v4, %v2520_v62 }
0x11f3   :  { %v1852_v8 = vmul.f32 %v3314_v7, %v2908_v5  ;;  %v1820_v9 = vpop.f32.mrb[19].mxu1  ;;  %v2523_v5 = vld [vmem:[%s4193_s16 + $0xd8] sm:$0xff] }
0x11f4   :  { %v1851_v6 = vmul.f32 %v3315_v63, %v1820_v9  ;;  %3127 = vmatprep.subr.bf16.mxu0 %v3126_v26  ;;  %v2525_v9 = vld [vmem:[%s4193_s16 + $0xe8] sm:$0xff] }
0x11f5   :  { %3129 = vmatpush3.bf16.msra.mxu0 %v3126_v26  ;;  %v2522_v26 = vld [vmem:[%s4193_s16 + $0xd0] sm:$0xff] }
0x11f6   :  { %v3130_v29 = vpack.c.bf16 %v1852_v8, %v1851_v6  ;;  %v2911_v48 = vpop.f32.mrb[20].mxu1  ;;  %v3178_v7 = vpack.c.bf16 %v2523_v5, %v2522_v26  ;;  %v2524_v8 = vld [vmem:[%s4193_s16 + $0xe0] sm:$0xff] }
0x11f7   :  { %v1854_v20 = vmul.f32 %v3316_v13, %v2911_v48  ;;  %v1830_v15 = vpop.f32.mrb[21].mxu1  ;;  %v3182_v63 = vpack.c.bf16 %v2525_v9, %v2524_v8  ;;  %v2529_v26 = vld [vmem:[%s4195_s18] ss:$0 sm:$0xff]  ;;  %s3348_s18 = smov [#allocation2]  }
0x11f8   :  { %v1853_v18 = vmul.f32 %v3317_v16, %v1830_v15  ;;  %3131 = vmatprep.subr.bf16.mxu0 %v3130_v29  ;;  %s2404_s9 = sshll.u32 %s3348_s18, 4  ;;  %s2405_s9 = int_to_ptr.vmem [resolvable:$true] %s2404_s9 }
0x11f9   :  { %3133 = vmatpush3.bf16.msra.mxu0 %v3130_v29  ;;  %p3325_p1 = scmp.lt.s32.totalorder %s2405_s9, %s2405_s9 }
0x11fa   :  { %v3134_v31 = vpack.c.bf16 %v1854_v20, %v1853_v18  ;;  %v2914_v23 = vpop.f32.mrb[22].mxu1  ;;  %v2503_v18 = vld [vmem:[%s4189_s12 + $0x1] ss:$0 sm:$0xff] }
0x11fb   :  { %v1856_v30 = vmul.f32 %v3318_v24, %v2914_v23  ;;  %v1840_v32 = vpop.f32.mrb[23].mxu1  ;;  %v2504_v23 = vld [vmem:[%s4190_s13 + $0x1] ss:$0 sm:$0xff] }
0x11fc   :  { %v1855_v35 = vmul.f32 %v3319_v34, %v1840_v32  ;;  %3135 = vmatprep.subr.bf16.mxu0 %v3134_v31 }
0x11fd   :  { %3137 = vmatpush3.bf16.msra.mxu0 %v3134_v31 }
0x11fe   :  { %v3138_v36 = vpack.c.bf16 %v1856_v30, %v1855_v35 }
0x1200   :  { %3139 = vmatprep.subr.bf16.mxu0 %v3138_v36 }
0x1201   :  { %3141 = vmatpush3.bf16.msra.mxu0 %v3138_v36 }
0x1202   :  { %3151 = vmatprep.subr.bf16.mxu0 %v3150_v53 }
0x1204   :  { %2932 = vmatmul.mubr.msk.f32.vlgmr.msra.gmra.mrb[38].mxu0 %vm98_vm0, %v3774_v57 }
0x1205   :  { %3153 = vmatpush3.bf16.msra.mxu0 %v3150_v53 }
0x1206   :  { %3155 = vmatprep.subr.bf16.mxu0 %v3154_v61 }
0x1209   :  { %3157 = vmatpush3.bf16.msra.mxu0 %v3154_v61 }
0x12d7   :  { %v2933_v38 = vpop.f32.mrb[38].mxu0 }
0x12d8   :  { %v1923_v37 = vpop.f32.mrb[39].mxu0 }
0x12d9   :  { %2942 = vmatprep.mubr.msk.f32.mxu1 %vm208_vm3, %v1923_v37  ;;  %v2527_v37 = vld [vmem:[%s4193_s16 + $0xf8] sm:$0xff] }
0x12da   :  { %2943 = vmatmul.mubr.msk.f32.vlgmr.msra.gmra.mrb[24].mxu1 %vm208_vm3, %v2933_v38  ;;  %v2526_v38 = vld [vmem:[%s4193_s16 + $0xf0] sm:$0xff] }
0x12db   :  { %3161 = vmatpush3.bf16.msra.mxu1 %v3158_v11  ;;  %v2306_v11 = vld [vmem:[%s4197_s20 + $0x8] sm:$0xff] }
0x12dc   :  { %3163 = vmatprep.subr.bf16.mxu1 %v3162_v1  ;;  %v3190_v0 = vpack.c.bf16 %v2306_v11, %v2305_v59 }
0x12de   :  { %3191 = vmatprep.subr.bf16.mxu0 %v3190_v0 }
0x12df   :  { %3165 = vmatpush3.bf16.msra.mxu1 %v3162_v1  ;;  %v2307_v1 = vld [vmem:[%s4197_s20 + $0x10] sm:$0xff] }
0x12e0   :  { %3167 = vmatprep.subr.bf16.mxu1 %v3166_v3  ;;  %v3194_v10 = vpack.c.bf16 %v2308_v17, %v2307_v1 }
0x12e3   :  { %3169 = vmatpush3.bf16.msra.mxu1 %v3166_v3 }
0x12e4   :  { %3171 = vmatprep.subr.bf16.mxu1 %v3170_v27 }
0x12e7   :  { %3173 = vmatpush3.bf16.msra.mxu1 %v3170_v27 }
0x12e8   :  { %3175 = vmatprep.subr.bf16.mxu1 %v3174_v25 }
0x12eb   :  { %3177 = vmatpush3.bf16.msra.mxu1 %v3174_v25 }
0x12ec   :  { %3179 = vmatprep.subr.bf16.mxu1 %v3178_v7 }
0x12ef   :  { %3181 = vmatpush3.bf16.msra.mxu1 %v3178_v7  ;;  %v2530_v7 = vld [vmem:[%s4196_s19] ss:$0 sm:$0xff]  ;;  %s3320_s19 = scalar_lea.vmem %s2405_s9, 256 }
0x12f0   :  { %3183 = vmatprep.subr.bf16.mxu1 %v3182_v63  ;;  %p3321_p0 = scmp.ne.s32.totalorder %s2405_s9, %s3320_s19  ;;  %p3326_p2 = scmp.lt.s32.totalorder %s3320_s19, %s3320_s19 }
0x12f2   :  { %p3327_p3 = por %p3326_p2, %p3325_p1 }
0x12f3   :  { %3185 = vmatpush3.bf16.msra.mxu1 %v3182_v63 }
0x12f4   :  { %p3328_p4 = pnand %p3327_p3, %p3321_p0 }
0x13ad   :  { %v2944_v33 = vpop.f32.mrb[24].mxu1 }
0x13ae   :  { %v2009_v40 = vpop.f32.mrb[25].mxu1  ;;  %v2019_v55 = vadd.f32 %v2944_v33, %v3883_v60  ;;  %v3186_v33 = vpack.c.bf16 %v2527_v37, %v2526_v38 }
0x13af   :  { %v2018_v43 = vadd.f32 %v2009_v40, %v3885_v14 }
0x13b0   :  { %v4042_v45 = vadd.f32 %v2502_v39, %v2019_v55  ;;  %3187 = vmatprep.subr.bf16.mxu1 %v3186_v33 }
0x13b1   :  { %v4040_v41 = vadd.f32 %v2502_v39, %v2018_v43  ;;  %3189 = vmatpush3.bf16.msra.mxu1 %v3186_v33  ;;  %v2509_v39 = vld [vmem:[%s4192_s15 + $0x1] ss:$0 sm:$0xff] }
0x13b2   :  { %v2032_v42 = vsel %vm208_vm3, %v4042_v45, 0.0 }
0x13b3   :  { %v2029_v57 = vsel %vm208_vm3, %v4040_v41, 0.0 }
0x13b4   :  { %2030 = vadd.xlane.f32.xlu0 %v2029_v57 }
0x13b8   :  { %2033 = vadd.xlane.f32.xlu0 %v2032_v42 }
0x1441   :  { %v2031_v49 = vpop.xlane.xlu0 %2030 }
0x1442   :  { %v2035_v22 = vmul.f32 0.03125, %v2031_v49 }
0x1444   :  { %v4049_v51 = vsub.f32 %v4040_v41, %v2035_v22 }
0x1445   :  { %v2034_v60 = vpop.xlane.xlu0 %2033 }
0x1446   :  { %v2036_v2 = vmul.f32 0.03125, %v2034_v60  ;;  %v2039_v14 = vmul.f32 %v4049_v51, %v4049_v51 }
0x1448   :  { %v4054_v47 = vsub.f32 %v4042_v45, %v2036_v2  ;;  %v2041_v12 = vsel %vm208_vm3, %v2039_v14, 0.0 }
0x1449   :  { %2042 = vadd.xlane.f32.xlu0 %v2041_v12 }
0x144a   :  { %v2040_v50 = vmul.f32 %v4054_v47, %v4054_v47 }
0x144c   :  { %v2044_v46 = vsel %vm208_vm3, %v2040_v50, 0.0 }
0x144d   :  { %2045 = vadd.xlane.f32.xlu0 %v2044_v46 }
0x14d6   :  { %v2043_v6 = vpop.xlane.xlu0 %2042 }
0x14d7   :  { %v2047_v29 = vmul.f32 0.03125, %v2043_v6 }
0x14d9   :  { %v2049_v48 = vadd.f32 1e-05, %v2047_v29 }
0x14da   :  { %v2046_v13 = vpop.xlane.xlu0 %2045 }
0x14db   :  { %3304 = vrsqrt.f32 %v2049_v48  ;;  %v2048_v20 = vmul.f32 0.03125, %v2046_v13  ;;  %v2531_v13 = vld [vmem:[%s4198_s21] ss:$0 sm:$0xff] }
0x14dd   :  { %v2050_v15 = vadd.f32 1e-05, %v2048_v20 }
0x14df   :  { %3306 = vrsqrt.f32 %v2050_v15 }
0x14e5   :  { %v3305_v16 = vpop.eup %3304 }
0x14e6   :  { %v2053_v31 = vmul.f32 %v3305_v16, %v4049_v51  ;;  %v2528_v51 = vld [vmem:[%s4225_s2 + $0x1] ss:$0 sm:$0xff] }
0x14e8   :  { %v2059_v24 = vmul.f32 %v2503_v18, %v2053_v31 }
0x14e9   :  { %v3307_v30 = vpop.eup %3306 }
0x14ea   :  { %v2054_v32 = vmul.f32 %v3307_v30, %v4054_v47  ;;  %v2065_v34 = vadd.f32 %v2504_v23, %v2059_v24 }
0x14ec   :  { %v2060_v35 = vmul.f32 %v2503_v18, %v2054_v32  ;;  %2953 = vmatprep.mubr.msk.f32.mxu0 %vm208_vm3, %v2065_v34 }
0x14ee   :  { %v2066_v36 = vadd.f32 %v2504_v23, %v2060_v35 }
0x14f0   :  { %2954 = vmatmul.mubr.msk.f32.vlgmr.msra.gmra.mrb[40].mxu0 %vm208_vm3, %v2066_v36 }
0x14f1   :  { %3193 = vmatpush3.bf16.msra.mxu0 %v3190_v0 }
0x14f2   :  { %3195 = vmatprep.subr.bf16.mxu0 %v3194_v10 }
0x14f5   :  { %3197 = vmatpush3.bf16.msra.mxu0 %v3194_v10 }
0x15c3   :  { %v2955_v40 = vpop.f32.mrb[40].mxu0 }
0x15c4   :  { %v2155_v55 = vadd.f32 %v2955_v40, %v2509_v39  ;;  %v2149_v43 = vpop.f32.mrb[41].mxu0 }
0x15c5   :  { %v2150_v57 = vadd.f32 %v2509_v39, %v2149_v43 }
0x15c6   :  { %v2159_v49 = vmax.f32 %v2155_v55, 0.0 }
0x15c7   :  { %v2158_v42 = vmax.f32 %v2150_v57, 0.0 }
0x15c9   :  { %2988 = vmatprep.mubr.f32.mxu1 %v2158_v42 }
0x15ca   :  { %2989 = vmatmul.mubr.f32.vlgmr.msra.gmra.mrb[26].mxu1 %v2159_v49 }
0x169d   :  { %v2990_v22 = vpop.f32.mrb[26].mxu1 }
0x169e   :  { %v2253_v60 = vadd.f32 %v2990_v22, %v4042_v45  ;;  %v2243_v2 = vpop.f32.mrb[27].mxu1 }
0x169f   :  { %v2252_v14 = vadd.f32 %v2243_v2, %v4040_v41 }
0x16a0   :  { %v2260_v47 = vadd.f32 %v2528_v51, %v2253_v60 }
0x16a1   :  { %v2259_v12 = vadd.f32 %v2528_v51, %v2252_v14 }
0x16a2   :  { %v2266_v50 = vsel %vm208_vm3, %v2260_v47, 0.0 }
0x16a3   :  { %2267 = vadd.xlane.f32.xlu0 %v2266_v50  ;;  %v2263_v46 = vsel %vm208_vm3, %v2259_v12, 0.0 }
0x16a4   :  { %2264 = vadd.xlane.f32.xlu1 %v2263_v46 }
0x1730   :  { %v2268_v28 = vpop.xlane.xlu0 %2267 }
0x1731   :  { %v2270_v56 = vmul.f32 0.03125, %v2268_v28  ;;  %v2265_v53 = vpop.xlane.xlu1 %2264 }
0x1732   :  { %v2269_v52 = vmul.f32 0.03125, %v2265_v53 }
0x1733   :  { %v2272_v44 = vsub.f32 %v2260_v47, %v2270_v56 }
0x1734   :  { %v2271_v61 = vsub.f32 %v2259_v12, %v2269_v52 }
0x1735   :  { %v2274_v58 = vmul.f32 %v2272_v44, %v2272_v44 }
0x1736   :  { %v2273_v54 = vmul.f32 %v2271_v61, %v2271_v61 }
0x1737   :  { %v2278_v41 = vsel %vm208_vm3, %v2274_v58, 0.0 }
0x1738   :  { %v2275_v45 = vsel %vm208_vm3, %v2273_v54, 0.0 }
0x1739   :  { %2276 = vadd.xlane.f32.xlu0 %v2275_v45 }
0x173d   :  { %2279 = vadd.xlane.f32.xlu0 %v2278_v41 }
0x17c6   :  { %v2277_v3 = vpop.xlane.xlu0 %2276 }
0x17c7   :  { %v2281_v19 = vmul.f32 0.03125, %v2277_v3 }
0x17c9   :  { %v2283_v21 = vadd.f32 1e-05, %v2281_v19 }
0x17ca   :  { %v2280_v27 = vpop.xlane.xlu0 %2279 }
0x17cb   :  { %3308 = vrsqrt.f32 %v2283_v21  ;;  %v2282_v62 = vmul.f32 0.03125, %v2280_v27 }
0x17cd   :  { %v2284_v4 = vadd.f32 1e-05, %v2282_v62 }
0x17cf   :  { %3310 = vrsqrt.f32 %v2284_v4 }
0x17d5   :  { %v3309_v25 = vpop.eup %3308 }
0x17d6   :  { %v2287_v5 = vmul.f32 %v3309_v25, %v2271_v61 }
0x17d8   :  { %v2295_v8 = vmul.f32 %v2529_v26, %v2287_v5 }
0x17d9   :  { %v3311_v9 = vpop.eup %3310 }
0x17da   :  { %v2288_v63 = vmul.f32 %v3311_v9, %v2272_v44  ;;  %v2303_v6 = vadd.f32 %v2530_v7, %v2295_v8 }
0x17dc   :  { %v2296_v29 = vmul.f32 %v2529_v26, %v2288_v63  ;;  %2999 = vmatprep.mubr.msk.f32.mxu0 %vm208_vm3, %v2303_v6 }
0x17de   :  { %v2304_v48 = vadd.f32 %v2530_v7, %v2296_v29 }
0x17e0   :  { %3000 = vmatmul.mubr.msk.f32.vlgmr.msra.gmra.mrb[42].mxu0 %vm208_vm3, %v2304_v48 }
0x18b3   :  { %v3001_v20 = vpop.f32.mrb[42].mxu0 }
0x18b4   :  { %v2394_v15 = vadd.f32 %v3001_v20, %v2531_v13  ;;  %v2388_v16 = vpop.f32.mrb[43].mxu0 }
0x18b5   :  { %v2389_v18 = vadd.f32 %v2531_v13, %v2388_v16 }
0x18b6   :  { %2398 = vst [vmem:[#allocation2 + $0x8] sm:$0xff] %v2394_v15 }
0x18b7   :  { %2397 = vst [vmem:[#allocation2] sm:$0xff] %v2389_v18 }
0x18b8   :  { %3331 = shalt.err (!%p3328_p4)
}
0x18b9   :  { %s3332_s21 = scalar_lea.hbm %s4199_s22, 256 }
0x18ba   :  { %p3333_p5 = scmp.ne.s32.totalorder %s4199_s22, %s3332_s21  ;;  %p3336_p6 = scmp.lt.u32.totalorder %s3332_s21, %s4199_s22 }
0x18bc   :  { %p3338_p7 = pnand %p3336_p6, %p3333_p5 }
0x18be   :  { %3341 = shalt.err (!%p3338_p7)
}
0x18bf   :  { %s3349_s12 = smov 128   ;;  %s3350_s11 = smov 8  }
0x18c0   :  { %2410 = dma.vmem_to_hbm [thread:$0]  %s2405_s9, 256, %s4199_s22, [#allocation3], %s3349_s12, %s3349_s12, %s3350_s11  }
0x18c1   :  { %3342 = dma.done.wait [#allocation3], 256  }
0x18c2   :  { %3343 = vsyncadd [#allocation3], 4294967040 }
0x18c3   :  { %2414 = vsyncpa [#allocation3], 1 }

</bundles_post_ra>
